<compile_context>
chip_gen: v7x
topology: tpu7x:2x2x1
jax: 0.10.0
libtpu: 0.0.40
codegen_flags: <defaults>
</compile_context>

<pallas_src>
import functools

import numpy as np

import jax
import jax.numpy as jnp
from jax.experimental import pallas as pl
from jax.experimental.pallas import tpu as pltpu


# ----------------------------- Pallas kernel -------------------------------

def _fused_kernel(xph_ref, g_ref, w1_ref, b1_ref, w2_ref, b2_ref, o_ref, *,
                  taps, stride):
    """Per-sample fused conv7x7/s2 + avg-pool(->6x6) + Linear1 + Linear2.

    xph_ref: [1, stride, R, Wp]  row-phase-split padded input (bf16)
    g_ref:   [taps, Wp, 6*Cout]  banded (conv o pool) width matrices (bf16)
    w1_ref:  [6, 6*Cout, 256]    Linear1 weights, permuted to (i, j, c) (bf16)
    b1_ref:  [1, 256] (f32)      w2_ref: [256, 3] (bf16)  b2_ref: [1, 3] (f32)
    o_ref:   [1, 1, 3] (f32)
    """
    f = g_ref.shape[-1]                       # 6 * Cout lanes, packed (j, c)
    acc = jnp.zeros((6, f), jnp.float32)      # pooled rows i = 0..5

    # conv+pool as `taps` banded MXU matmuls, accumulated in f32 in VMEM.
    for u in range(taps):
        pu, au = u % stride, u // stride
        p = jnp.dot(xph_ref[0, pu], g_ref[u],
                    preferred_element_type=jnp.float32)      # [R, 6*Cout]
        acc = acc + p[au:au + 6, :]

    # Linear1 (2304 -> 256): flatten folded into 6 K=384 matmuls (row i of the
    # pooled accumulator against the matching pre-permuted weight block).
    acc_bf = acc.astype(jnp.bfloat16)
    h = b1_ref[...]                                           # [1, 256] f32
    for i in range(6):
        h = h + jnp.dot(acc_bf[i:i + 1, :], w1_ref[i],
                        preferred_element_type=jnp.float32)   # [1, 256]

    # Linear2 (256 -> 3).
    out = jnp.dot(h.astype(jnp.bfloat16), w2_ref[...],
                  preferred_element_type=jnp.float32) + b2_ref[...]   # [1, 3]

    # TODO(synk): nn.Dropout(p=0.5) is identity in eval mode.
    o_ref[0] = out


# --------------------------- parameter prep --------------------------------

def prepare_params(conv_w, w1, b1, w2, b2, H, W):
    """One-time prep: fold conv+pool into banded matrices, permute Linear1,
    transpose Linear2, cast matmul operands to bf16."""
    KH = KW = 7
    S, P = 2, 3
    Cout = int(conv_w.shape[0])
    assert conv_w.shape == (Cout, 1, KH, KW)
    OH = (H + 2 * P - KH) // S + 1
    OW = (W + 2 * P - KW) // S + 1
    # TODO(synk): adaptive-pool bridge requires conv output divisible by 6.
    assert OH % 6 == 0 and OW % 6 == 0, "conv output must be divisible by 6"
    sh, sw = OH // 6, OW // 6
    assert w1.shape == (256, Cout * 36) and w2.shape == (3, 256)

    Hp, Wp = H + 2 * P, W + 2 * P
    U = 2 * (sh - 1) + KH                       # height taps of fused op
    V = 2 * (sw - 1) + KW                       # width taps of fused op
    stride = 2 * sh                             # effective row stride
    R = max(-(-Hp // stride), 6 + (U - 1) // stride)   # rows per row-phase

    # Effective (conv o avg-pool) kernel, stride (2*sh, 2*sw).
    wk = np.transpose(np.asarray(conv_w, np.float32)[:, 0], (1, 2, 0))  # [7,7,Cout]
    weff = np.zeros((U, V, Cout), np.float32)
    for a in range(sh):
        for b in range(sw):
            weff[2 * a:2 * a + KH, 2 * b:2 * b + KW, :] += wk
    weff /= float(sh * sw)

    # Banded width matrix: G[u, w, j*Cout + c] = weff[u, w - 2*sw*j, c].
    G = np.zeros((U, Wp, 6 * Cout), np.float32)
    for j in range(6):
        base = 2 * sw * j
        G[:, base:base + V, j * Cout:(j + 1) * Cout] = weff

    # Linear1 weight permuted to the kernel's pooled layout:
    # W1p[i, j*Cout + c, h] = w1[h, c*36 + i*6 + j]   (torch NCHW flatten).
    w1r = np.asarray(w1, np.float32).reshape(256, Cout, 6, 6)
    W1p = np.transpose(w1r, (2, 3, 1, 0)).reshape(6, 6 * Cout, 256)

    W2t = np.transpose(np.asarray(w2, np.float32))            # [256, 3]

    meta = dict(U=U, stride=stride, R=R, Wp=Wp, Cout=Cout)
    return (
        jnp.asarray(G, jnp.bfloat16),
        jnp.asarray(W1p, jnp.bfloat16),
        jnp.asarray(b1, jnp.float32).reshape(1, 256),
        jnp.asarray(W2t, jnp.bfloat16),
        jnp.asarray(b2, jnp.float32).reshape(1, 3),
        meta,
    )


def _preprocess_input(x, meta):
    """pad(3) + row-phase split so all in-kernel row accesses are unit-stride.

    Returns xph[n, pu, r, w] = x_padded[n, stride*r + pu, w]  (bf16).
    """
    assert x.shape[1] == 1, "module is Conv2d(1, 64, ...)"
    N = x.shape[0]
    P = 3
    stride, R, Wp = meta["stride"], meta["R"], meta["Wp"]
    xp = jnp.pad(x[:, 0].astype(jnp.float32), ((0, 0), (P, P), (P, P)))
    xp = jnp.pad(xp, ((0, 0), (0, stride * R - xp.shape[1]), (0, 0)))
    xph = xp.reshape(N, R, stride, Wp).transpose(0, 2, 1, 3)
    return xph.astype(jnp.bfloat16)


# ------------------------------- forward -----------------------------------

def alexnet_forward(x, prepared):
    """Forward pass mirroring the PyTorch module (eval mode)."""
    G, W1p, b1r, W2t, b2r, meta = prepared
    N = x.shape[0]
    U, stride, R, Wp = meta["U"], meta["stride"], meta["R"], meta["Wp"]
    F = G.shape[-1]

    xph = _preprocess_input(x, meta)

    flops = N * (U * 2 * R * Wp * F
                 + 2 * 6 * W1p.shape[1] * W1p.shape[2]
                 + 2 * W2t.shape[0] * W2t.shape[1])
    bytes_accessed = int(sum(int(a.size) * a.dtype.itemsize
                             for a in (xph, G, W1p, b1r, W2t, b2r))
                         + N * 3 * 4)

    out3 = pl.pallas_call(
        functools.partial(_fused_kernel, taps=U, stride=stride),
        out_shape=jax.ShapeDtypeStruct((N, 1, 3), jnp.float32),
        grid=(N,),
        in_specs=[
            pl.BlockSpec((1, stride, R, Wp), lambda n: (n, 0, 0, 0)),
            pl.BlockSpec(G.shape, lambda n: (0, 0, 0)),
            pl.BlockSpec(W1p.shape, lambda n: (0, 0, 0)),
            pl.BlockSpec(b1r.shape, lambda n: (0, 0)),
            pl.BlockSpec(W2t.shape, lambda n: (0, 0)),
            pl.BlockSpec(b2r.shape, lambda n: (0, 0)),
        ],
        out_specs=pl.BlockSpec((1, 1, 3), lambda n: (n, 0, 0)),
        compiler_params=pltpu.CompilerParams(
            dimension_semantics=("parallel",)),
        cost_estimate=pl.CostEstimate(
            flops=flops, transcendentals=0, bytes_accessed=bytes_accessed),
    )(xph, G, W1p, b1r, W2t, b2r)

    return out3[:, 0, :]


# ------------------------------ main / test --------------------------------

if __name__ == "__main__":
    key = jax.random.PRNGKey(0)
    k_x, k_cw, k_w1, k_b1, k_w2, k_b2 = jax.random.split(key, 6)

    # Grayscale NCHW input, 24x24 so conv(s=2) -> 12x12 -> pool -> 6x6 -> 2304.
    N, C, H, W = 2, 1, 24, 24
    x = jax.random.normal(k_x, (N, C, H, W), dtype=jnp.float32)

    # Deterministic parameters (shapes from the module __init__).
    conv_w = jax.random.normal(k_cw, (64, 1, 7, 7), dtype=jnp.float32) * 0.1
    w1 = jax.random.normal(k_w1, (256, 2304), dtype=jnp.float32) * 0.02
    b1 = jax.random.normal(k_b1, (256,), dtype=jnp.float32) * 0.02
    w2 = jax.random.normal(k_w2, (3, 256), dtype=jnp.float32) * 0.05
    b2 = jax.random.normal(k_b2, (3,), dtype=jnp.float32) * 0.05

    prepared = prepare_params(conv_w, w1, b1, w2, b2, H, W)
    fwd = jax.jit(lambda inp: alexnet_forward(inp, prepared))
    out = jax.block_until_ready(fwd(x))
    assert out.shape == (N, 3)

    # Plain-JAX f32 reference (same math, no Pallas).
    y_ref = jax.lax.conv_general_dilated(
        x, conv_w, window_strides=(2, 2), padding=((3, 3), (3, 3)),
        dimension_numbers=("NCHW", "OIHW", "NCHW"))
    sh, sw = y_ref.shape[2] // 6, y_ref.shape[3] // 6
    y_ref = y_ref.reshape(N, 64, 6, sh, 6, sw).mean(axis=(3, 5))
    feat_ref = y_ref.reshape(N, -1)
    ref = (feat_ref @ w1.T + b1) @ w2.T + b2

    # Kernel uses bf16 matmul inputs with f32 accumulation -> loosened tol.
    assert jnp.allclose(out, ref, rtol=3e-2, atol=3e-2), "mismatch vs reference"

    print("KERNEL_OK")
</pallas_src>

<mosaic_0001>
module attributes {stable_mosaic.version = 11 : i64} {
  func.func @_fused_kernel(%arg0: i32, %arg1: memref<1x4x8x30xbf16, #tpu.memory_space<vmem>>, %arg2: memref<9x30x384xbf16, #tpu.memory_space<vmem>>, %arg3: memref<6x384x256xbf16, #tpu.memory_space<vmem>>, %arg4: memref<1x256xf32, #tpu.memory_space<vmem>>, %arg5: memref<256x3xbf16, #tpu.memory_space<vmem>>, %arg6: memref<1x3xf32, #tpu.memory_space<vmem>>, %arg7: memref<1x1x3xf32, #tpu.memory_space<vmem>>) attributes {dimension_semantics = [#tpu.dimension_semantics<parallel>], iteration_bounds = array<i64: 2>, scalar_prefetch = 0 : i64, scratch_operands = 0 : i64, tpu.core_type = #tpu.core_type<tc>, window_params = [{transform_indices = @transform_0, window_bounds = array<i64: 1, 4, 8, 30>}, {pipeline_mode = #tpu.pipeline_mode<synchronous>, transform_indices = @transform_1, window_bounds = array<i64: 9, 30, 384>}, {pipeline_mode = #tpu.pipeline_mode<synchronous>, transform_indices = @transform_2, window_bounds = array<i64: 6, 384, 256>}, {pipeline_mode = #tpu.pipeline_mode<synchronous>, transform_indices = @transform_3, window_bounds = array<i64: 1, 256>}, {pipeline_mode = #tpu.pipeline_mode<synchronous>, transform_indices = @transform_4, window_bounds = array<i64: 256, 3>}, {pipeline_mode = #tpu.pipeline_mode<synchronous>, transform_indices = @transform_5, window_bounds = array<i64: 1, 3>}, {transform_indices = @transform_6, window_bounds = array<i64: 1, 1, 3>}]} {
    %cst = arith.constant 0.000000e+00 : f32
    %0 = vector.broadcast %cst : f32 to vector<6x384xf32>
    %c0 = arith.constant 0 : index
    %c0_0 = arith.constant 0 : index
    %c0_1 = arith.constant 0 : index
    %c0_2 = arith.constant 0 : index
    %1 = vector.load %arg1[%c0, %c0_0, %c0_1, %c0_2] : memref<1x4x8x30xbf16, #tpu.memory_space<vmem>>, vector<1x1x8x30xbf16>
    %2 = vector.shape_cast %1 : vector<1x1x8x30xbf16> to vector<8x30xbf16>
    %c0_3 = arith.constant 0 : index
    %c0_4 = arith.constant 0 : index
    %c0_5 = arith.constant 0 : index
    %3 = vector.load %arg2[%c0_3, %c0_4, %c0_5] : memref<9x30x384xbf16, #tpu.memory_space<vmem>>, vector<1x30x384xbf16>
    %4 = vector.shape_cast %3 : vector<1x30x384xbf16> to vector<30x384xbf16>
    %cst_6 = arith.constant dense<0.000000e+00> : vector<8x384xf32>
    %5 = tpu.matmul %2, %4, %cst_6 {dimension_numbers = #tpu.dot_dimension_numbers<[1], [0], [0], [1], [0, 0, 1, 1], [], []>} : vector<8x30xbf16>, vector<30x384xbf16>, vector<8x384xf32> -> vector<8x384xf32>
    %6 = vector.extract_strided_slice %5 {offsets = [0, 0], sizes = [6, 384], strides = [1, 1]} : vector<8x384xf32> to vector<6x384xf32>
    %7 = arith.addf %0, %6 : vector<6x384xf32>
    %c0_7 = arith.constant 0 : index
    %c1 = arith.constant 1 : index
    %c0_8 = arith.constant 0 : index
    %c0_9 = arith.constant 0 : index
    %8 = vector.load %arg1[%c0_7, %c1, %c0_8, %c0_9] : memref<1x4x8x30xbf16, #tpu.memory_space<vmem>>, vector<1x1x8x30xbf16>
    %9 = vector.shape_cast %8 : vector<1x1x8x30xbf16> to vector<8x30xbf16>
    %c1_10 = arith.constant 1 : index
    %c0_11 = arith.constant 0 : index
    %c0_12 = arith.constant 0 : index
    %10 = vector.load %arg2[%c1_10, %c0_11, %c0_12] : memref<9x30x384xbf16, #tpu.memory_space<vmem>>, vector<1x30x384xbf16>
    %11 = vector.shape_cast %10 : vector<1x30x384xbf16> to vector<30x384xbf16>
    %cst_13 = arith.constant dense<0.000000e+00> : vector<8x384xf32>
    %12 = tpu.matmul %9, %11, %cst_13 {dimension_numbers = #tpu.dot_dimension_numbers<[1], [0], [0], [1], [0, 0, 1, 1], [], []>} : vector<8x30xbf16>, vector<30x384xbf16>, vector<8x384xf32> -> vector<8x384xf32>
    %13 = vector.extract_strided_slice %12 {offsets = [0, 0], sizes = [6, 384], strides = [1, 1]} : vector<8x384xf32> to vector<6x384xf32>
    %14 = arith.addf %7, %13 : vector<6x384xf32>
    %c0_14 = arith.constant 0 : index
    %c2 = arith.constant 2 : index
    %c0_15 = arith.constant 0 : index
    %c0_16 = arith.constant 0 : index
    %15 = vector.load %arg1[%c0_14, %c2, %c0_15, %c0_16] : memref<1x4x8x30xbf16, #tpu.memory_space<vmem>>, vector<1x1x8x30xbf16>
    %16 = vector.shape_cast %15 : vector<1x1x8x30xbf16> to vector<8x30xbf16>
    %c2_17 = arith.constant 2 : index
    %c0_18 = arith.constant 0 : index
    %c0_19 = arith.constant 0 : index
    %17 = vector.load %arg2[%c2_17, %c0_18, %c0_19] : memref<9x30x384xbf16, #tpu.memory_space<vmem>>, vector<1x30x384xbf16>
    %18 = vector.shape_cast %17 : vector<1x30x384xbf16> to vector<30x384xbf16>
    %cst_20 = arith.constant dense<0.000000e+00> : vector<8x384xf32>
    %19 = tpu.matmul %16, %18, %cst_20 {dimension_numbers = #tpu.dot_dimension_numbers<[1], [0], [0], [1], [0, 0, 1, 1], [], []>} : vector<8x30xbf16>, vector<30x384xbf16>, vector<8x384xf32> -> vector<8x384xf32>
    %20 = vector.extract_strided_slice %19 {offsets = [0, 0], sizes = [6, 384], strides = [1, 1]} : vector<8x384xf32> to vector<6x384xf32>
    %21 = arith.addf %14, %20 : vector<6x384xf32>
    %c0_21 = arith.constant 0 : index
    %c3 = arith.constant 3 : index
    %c0_22 = arith.constant 0 : index
    %c0_23 = arith.constant 0 : index
    %22 = vector.load %arg1[%c0_21, %c3, %c0_22, %c0_23] : memref<1x4x8x30xbf16, #tpu.memory_space<vmem>>, vector<1x1x8x30xbf16>
    %23 = vector.shape_cast %22 : vector<1x1x8x30xbf16> to vector<8x30xbf16>
    %c3_24 = arith.constant 3 : index
    %c0_25 = arith.constant 0 : index
    %c0_26 = arith.constant 0 : index
    %24 = vector.load %arg2[%c3_24, %c0_25, %c0_26] : memref<9x30x384xbf16, #tpu.memory_space<vmem>>, vector<1x30x384xbf16>
    %25 = vector.shape_cast %24 : vector<1x30x384xbf16> to vector<30x384xbf16>
    %cst_27 = arith.constant dense<0.000000e+00> : vector<8x384xf32>
    %26 = tpu.matmul %23, %25, %cst_27 {dimension_numbers = #tpu.dot_dimension_numbers<[1], [0], [0], [1], [0, 0, 1, 1], [], []>} : vector<8x30xbf16>, vector<30x384xbf16>, vector<8x384xf32> -> vector<8x384xf32>
    %27 = vector.extract_strided_slice %26 {offsets = [0, 0], sizes = [6, 384], strides = [1, 1]} : vector<8x384xf32> to vector<6x384xf32>
    %28 = arith.addf %21, %27 : vector<6x384xf32>
    %c0_28 = arith.constant 0 : index
    %c0_29 = arith.constant 0 : index
    %c0_30 = arith.constant 0 : index
    %c0_31 = arith.constant 0 : index
    %29 = vector.load %arg1[%c0_28, %c0_29, %c0_30, %c0_31] : memref<1x4x8x30xbf16, #tpu.memory_space<vmem>>, vector<1x1x8x30xbf16>
    %30 = vector.shape_cast %29 : vector<1x1x8x30xbf16> to vector<8x30xbf16>
    %c4 = arith.constant 4 : index
    %c0_32 = arith.constant 0 : index
    %c0_33 = arith.constant 0 : index
    %31 = vector.load %arg2[%c4, %c0_32, %c0_33] : memref<9x30x384xbf16, #tpu.memory_space<vmem>>, vector<1x30x384xbf16>
    %32 = vector.shape_cast %31 : vector<1x30x384xbf16> to vector<30x384xbf16>
    %cst_34 = arith.constant dense<0.000000e+00> : vector<8x384xf32>
    %33 = tpu.matmul %30, %32, %cst_34 {dimension_numbers = #tpu.dot_dimension_numbers<[1], [0], [0], [1], [0, 0, 1, 1], [], []>} : vector<8x30xbf16>, vector<30x384xbf16>, vector<8x384xf32> -> vector<8x384xf32>
    %34 = vector.extract_strided_slice %33 {offsets = [1, 0], sizes = [6, 384], strides = [1, 1]} : vector<8x384xf32> to vector<6x384xf32>
    %35 = arith.addf %28, %34 : vector<6x384xf32>
    %c0_35 = arith.constant 0 : index
    %c1_36 = arith.constant 1 : index
    %c0_37 = arith.constant 0 : index
    %c0_38 = arith.constant 0 : index
    %36 = vector.load %arg1[%c0_35, %c1_36, %c0_37, %c0_38] : memref<1x4x8x30xbf16, #tpu.memory_space<vmem>>, vector<1x1x8x30xbf16>
    %37 = vector.shape_cast %36 : vector<1x1x8x30xbf16> to vector<8x30xbf16>
    %c5 = arith.constant 5 : index
    %c0_39 = arith.constant 0 : index
    %c0_40 = arith.constant 0 : index
    %38 = vector.load %arg2[%c5, %c0_39, %c0_40] : memref<9x30x384xbf16, #tpu.memory_space<vmem>>, vector<1x30x384xbf16>
    %39 = vector.shape_cast %38 : vector<1x30x384xbf16> to vector<30x384xbf16>
    %cst_41 = arith.constant dense<0.000000e+00> : vector<8x384xf32>
    %40 = tpu.matmul %37, %39, %cst_41 {dimension_numbers = #tpu.dot_dimension_numbers<[1], [0], [0], [1], [0, 0, 1, 1], [], []>} : vector<8x30xbf16>, vector<30x384xbf16>, vector<8x384xf32> -> vector<8x384xf32>
    %41 = vector.extract_strided_slice %40 {offsets = [1, 0], sizes = [6, 384], strides = [1, 1]} : vector<8x384xf32> to vector<6x384xf32>
    %42 = arith.addf %35, %41 : vector<6x384xf32>
    %c0_42 = arith.constant 0 : index
    %c2_43 = arith.constant 2 : index
    %c0_44 = arith.constant 0 : index
    %c0_45 = arith.constant 0 : index
    %43 = vector.load %arg1[%c0_42, %c2_43, %c0_44, %c0_45] : memref<1x4x8x30xbf16, #tpu.memory_space<vmem>>, vector<1x1x8x30xbf16>
    %44 = vector.shape_cast %43 : vector<1x1x8x30xbf16> to vector<8x30xbf16>
    %c6 = arith.constant 6 : index
    %c0_46 = arith.constant 0 : index
    %c0_47 = arith.constant 0 : index
    %45 = vector.load %arg2[%c6, %c0_46, %c0_47] : memref<9x30x384xbf16, #tpu.memory_space<vmem>>, vector<1x30x384xbf16>
    %46 = vector.shape_cast %45 : vector<1x30x384xbf16> to vector<30x384xbf16>
    %cst_48 = arith.constant dense<0.000000e+00> : vector<8x384xf32>
    %47 = tpu.matmul %44, %46, %cst_48 {dimension_numbers = #tpu.dot_dimension_numbers<[1], [0], [0], [1], [0, 0, 1, 1], [], []>} : vector<8x30xbf16>, vector<30x384xbf16>, vector<8x384xf32> -> vector<8x384xf32>
    %48 = vector.extract_strided_slice %47 {offsets = [1, 0], sizes = [6, 384], strides = [1, 1]} : vector<8x384xf32> to vector<6x384xf32>
    %49 = arith.addf %42, %48 : vector<6x384xf32>
    %c0_49 = arith.constant 0 : index
    %c3_50 = arith.constant 3 : index
    %c0_51 = arith.constant 0 : index
    %c0_52 = arith.constant 0 : index
    %50 = vector.load %arg1[%c0_49, %c3_50, %c0_51, %c0_52] : memref<1x4x8x30xbf16, #tpu.memory_space<vmem>>, vector<1x1x8x30xbf16>
    %51 = vector.shape_cast %50 : vector<1x1x8x30xbf16> to vector<8x30xbf16>
    %c7 = arith.constant 7 : index
    %c0_53 = arith.constant 0 : index
    %c0_54 = arith.constant 0 : index
    %52 = vector.load %arg2[%c7, %c0_53, %c0_54] : memref<9x30x384xbf16, #tpu.memory_space<vmem>>, vector<1x30x384xbf16>
    %53 = vector.shape_cast %52 : vector<1x30x384xbf16> to vector<30x384xbf16>
    %cst_55 = arith.constant dense<0.000000e+00> : vector<8x384xf32>
    %54 = tpu.matmul %51, %53, %cst_55 {dimension_numbers = #tpu.dot_dimension_numbers<[1], [0], [0], [1], [0, 0, 1, 1], [], []>} : vector<8x30xbf16>, vector<30x384xbf16>, vector<8x384xf32> -> vector<8x384xf32>
    %55 = vector.extract_strided_slice %54 {offsets = [1, 0], sizes = [6, 384], strides = [1, 1]} : vector<8x384xf32> to vector<6x384xf32>
    %56 = arith.addf %49, %55 : vector<6x384xf32>
    %c0_56 = arith.constant 0 : index
    %c0_57 = arith.constant 0 : index
    %c0_58 = arith.constant 0 : index
    %c0_59 = arith.constant 0 : index
    %57 = vector.load %arg1[%c0_56, %c0_57, %c0_58, %c0_59] : memref<1x4x8x30xbf16, #tpu.memory_space<vmem>>, vector<1x1x8x30xbf16>
    %58 = vector.shape_cast %57 : vector<1x1x8x30xbf16> to vector<8x30xbf16>
    %c8 = arith.constant 8 : index
    %c0_60 = arith.constant 0 : index
    %c0_61 = arith.constant 0 : index
    %59 = vector.load %arg2[%c8, %c0_60, %c0_61] : memref<9x30x384xbf16, #tpu.memory_space<vmem>>, vector<1x30x384xbf16>
    %60 = vector.shape_cast %59 : vector<1x30x384xbf16> to vector<30x384xbf16>
    %cst_62 = arith.constant dense<0.000000e+00> : vector<8x384xf32>
    %61 = tpu.matmul %58, %60, %cst_62 {dimension_numbers = #tpu.dot_dimension_numbers<[1], [0], [0], [1], [0, 0, 1, 1], [], []>} : vector<8x30xbf16>, vector<30x384xbf16>, vector<8x384xf32> -> vector<8x384xf32>
    %62 = vector.extract_strided_slice %61 {offsets = [2, 0], sizes = [6, 384], strides = [1, 1]} : vector<8x384xf32> to vector<6x384xf32>
    %63 = arith.addf %56, %62 : vector<6x384xf32>
    %64 = arith.truncf %63 : vector<6x384xf32> to vector<6x384xbf16>
    %c0_63 = arith.constant 0 : index
    %c0_64 = arith.constant 0 : index
    %65 = vector.load %arg4[%c0_63, %c0_64] : memref<1x256xf32, #tpu.memory_space<vmem>>, vector<1x256xf32>
    %66 = vector.extract_strided_slice %64 {offsets = [0, 0], sizes = [1, 384], strides = [1, 1]} : vector<6x384xbf16> to vector<1x384xbf16>
    %c0_65 = arith.constant 0 : index
    %c0_66 = arith.constant 0 : index
    %c0_67 = arith.constant 0 : index
    %67 = vector.load %arg3[%c0_65, %c0_66, %c0_67] : memref<6x384x256xbf16, #tpu.memory_space<vmem>>, vector<1x384x256xbf16>
    %68 = vector.shape_cast %67 : vector<1x384x256xbf16> to vector<384x256xbf16>
    %cst_68 = arith.constant dense<0.000000e+00> : vector<1x256xf32>
    %69 = tpu.matmul %66, %68, %cst_68 {dimension_numbers = #tpu.dot_dimension_numbers<[1], [0], [0], [1], [0, 0, 1, 1], [], []>} : vector<1x384xbf16>, vector<384x256xbf16>, vector<1x256xf32> -> vector<1x256xf32>
    %70 = arith.addf %65, %69 : vector<1x256xf32>
    %71 = vector.extract_strided_slice %64 {offsets = [1, 0], sizes = [1, 384], strides = [1, 1]} : vector<6x384xbf16> to vector<1x384xbf16>
    %c1_69 = arith.constant 1 : index
    %c0_70 = arith.constant 0 : index
    %c0_71 = arith.constant 0 : index
    %72 = vector.load %arg3[%c1_69, %c0_70, %c0_71] : memref<6x384x256xbf16, #tpu.memory_space<vmem>>, vector<1x384x256xbf16>
    %73 = vector.shape_cast %72 : vector<1x384x256xbf16> to vector<384x256xbf16>
    %cst_72 = arith.constant dense<0.000000e+00> : vector<1x256xf32>
    %74 = tpu.matmul %71, %73, %cst_72 {dimension_numbers = #tpu.dot_dimension_numbers<[1], [0], [0], [1], [0, 0, 1, 1], [], []>} : vector<1x384xbf16>, vector<384x256xbf16>, vector<1x256xf32> -> vector<1x256xf32>
    %75 = arith.addf %70, %74 : vector<1x256xf32>
    %76 = vector.extract_strided_slice %64 {offsets = [2, 0], sizes = [1, 384], strides = [1, 1]} : vector<6x384xbf16> to vector<1x384xbf16>
    %c2_73 = arith.constant 2 : index
    %c0_74 = arith.constant 0 : index
    %c0_75 = arith.constant 0 : index
    %77 = vector.load %arg3[%c2_73, %c0_74, %c0_75] : memref<6x384x256xbf16, #tpu.memory_space<vmem>>, vector<1x384x256xbf16>
    %78 = vector.shape_cast %77 : vector<1x384x256xbf16> to vector<384x256xbf16>
    %cst_76 = arith.constant dense<0.000000e+00> : vector<1x256xf32>
    %79 = tpu.matmul %76, %78, %cst_76 {dimension_numbers = #tpu.dot_dimension_numbers<[1], [0], [0], [1], [0, 0, 1, 1], [], []>} : vector<1x384xbf16>, vector<384x256xbf16>, vector<1x256xf32> -> vector<1x256xf32>
    %80 = arith.addf %75, %79 : vector<1x256xf32>
    %81 = vector.extract_strided_slice %64 {offsets = [3, 0], sizes = [1, 384], strides = [1, 1]} : vector<6x384xbf16> to vector<1x384xbf16>
    %c3_77 = arith.constant 3 : index
    %c0_78 = arith.constant 0 : index
    %c0_79 = arith.constant 0 : index
    %82 = vector.load %arg3[%c3_77, %c0_78, %c0_79] : memref<6x384x256xbf16, #tpu.memory_space<vmem>>, vector<1x384x256xbf16>
    %83 = vector.shape_cast %82 : vector<1x384x256xbf16> to vector<384x256xbf16>
    %cst_80 = arith.constant dense<0.000000e+00> : vector<1x256xf32>
    %84 = tpu.matmul %81, %83, %cst_80 {dimension_numbers = #tpu.dot_dimension_numbers<[1], [0], [0], [1], [0, 0, 1, 1], [], []>} : vector<1x384xbf16>, vector<384x256xbf16>, vector<1x256xf32> -> vector<1x256xf32>
    %85 = arith.addf %80, %84 : vector<1x256xf32>
    %86 = vector.extract_strided_slice %64 {offsets = [4, 0], sizes = [1, 384], strides = [1, 1]} : vector<6x384xbf16> to vector<1x384xbf16>
    %c4_81 = arith.constant 4 : index
    %c0_82 = arith.constant 0 : index
    %c0_83 = arith.constant 0 : index
    %87 = vector.load %arg3[%c4_81, %c0_82, %c0_83] : memref<6x384x256xbf16, #tpu.memory_space<vmem>>, vector<1x384x256xbf16>
    %88 = vector.shape_cast %87 : vector<1x384x256xbf16> to vector<384x256xbf16>
    %cst_84 = arith.constant dense<0.000000e+00> : vector<1x256xf32>
    %89 = tpu.matmul %86, %88, %cst_84 {dimension_numbers = #tpu.dot_dimension_numbers<[1], [0], [0], [1], [0, 0, 1, 1], [], []>} : vector<1x384xbf16>, vector<384x256xbf16>, vector<1x256xf32> -> vector<1x256xf32>
    %90 = arith.addf %85, %89 : vector<1x256xf32>
    %91 = vector.extract_strided_slice %64 {offsets = [5, 0], sizes = [1, 384], strides = [1, 1]} : vector<6x384xbf16> to vector<1x384xbf16>
    %c5_85 = arith.constant 5 : index
    %c0_86 = arith.constant 0 : index
    %c0_87 = arith.constant 0 : index
    %92 = vector.load %arg3[%c5_85, %c0_86, %c0_87] : memref<6x384x256xbf16, #tpu.memory_space<vmem>>, vector<1x384x256xbf16>
    %93 = vector.shape_cast %92 : vector<1x384x256xbf16> to vector<384x256xbf16>
    %cst_88 = arith.constant dense<0.000000e+00> : vector<1x256xf32>
    %94 = tpu.matmul %91, %93, %cst_88 {dimension_numbers = #tpu.dot_dimension_numbers<[1], [0], [0], [1], [0, 0, 1, 1], [], []>} : vector<1x384xbf16>, vector<384x256xbf16>, vector<1x256xf32> -> vector<1x256xf32>
    %95 = arith.addf %90, %94 : vector<1x256xf32>
    %96 = arith.truncf %95 : vector<1x256xf32> to vector<1x256xbf16>
    %c0_89 = arith.constant 0 : index
    %c0_90 = arith.constant 0 : index
    %97 = vector.load %arg5[%c0_89, %c0_90] : memref<256x3xbf16, #tpu.memory_space<vmem>>, vector<256x3xbf16>
    %cst_91 = arith.constant dense<0.000000e+00> : vector<1x3xf32>
    %98 = tpu.matmul %96, %97, %cst_91 {dimension_numbers = #tpu.dot_dimension_numbers<[1], [0], [0], [1], [0, 0, 1, 1], [], []>} : vector<1x256xbf16>, vector<256x3xbf16>, vector<1x3xf32> -> vector<1x3xf32>
    %c0_92 = arith.constant 0 : index
    %c0_93 = arith.constant 0 : index
    %99 = vector.load %arg6[%c0_92, %c0_93] : memref<1x3xf32, #tpu.memory_space<vmem>>, vector<1x3xf32>
    %100 = arith.addf %98, %99 : vector<1x3xf32>
    %c0_94 = arith.constant 0 : index
    %c0_95 = arith.constant 0 : index
    %c0_96 = arith.constant 0 : index
    %101 = vector.load %arg7[%c0_94, %c0_95, %c0_96] : memref<1x1x3xf32, #tpu.memory_space<vmem>>, vector<1x1x3xf32>
    %102 = vector.shape_cast %101 : vector<1x1x3xf32> to vector<1x3xf32>
    %103 = vector.shape_cast %100 : vector<1x3xf32> to vector<1x1x3xf32>
    tpu.vector_store %arg7[%c0_94, %c0_95, %c0_96], %103 {strides = array<i32>} : memref<1x1x3xf32, #tpu.memory_space<vmem>>, vector<1x1x3xf32>,
    return
  }
  func.func @transform_0(%arg0: i32) -> (i32, i32, i32, i32) {
    %c0_i32 = arith.constant 0 : i32
    %c0_i32_0 = arith.constant 0 : i32
    %c0_i32_1 = arith.constant 0 : i32
    %c0_i32_2 = arith.constant 0 : i32
    return %arg0, %c0_i32, %c0_i32_0, %c0_i32_1 : i32, i32, i32, i32
  }
  func.func @transform_1(%arg0: i32) -> (i32, i32, i32) {
    %c0_i32 = arith.constant 0 : i32
    %c0_i32_0 = arith.constant 0 : i32
    %c0_i32_1 = arith.constant 0 : i32
    %c0_i32_2 = arith.constant 0 : i32
    return %c0_i32, %c0_i32_0, %c0_i32_1 : i32, i32, i32
  }
  func.func @transform_2(%arg0: i32) -> (i32, i32, i32) {
    %c0_i32 = arith.constant 0 : i32
    %c0_i32_0 = arith.constant 0 : i32
    %c0_i32_1 = arith.constant 0 : i32
    %c0_i32_2 = arith.constant 0 : i32
    return %c0_i32, %c0_i32_0, %c0_i32_1 : i32, i32, i32
  }
  func.func @transform_3(%arg0: i32) -> (i32, i32) {
    %c0_i32 = arith.constant 0 : i32
    %c0_i32_0 = arith.constant 0 : i32
    %c0_i32_1 = arith.constant 0 : i32
    return %c0_i32, %c0_i32_0 : i32, i32
  }
  func.func @transform_4(%arg0: i32) -> (i32, i32) {
    %c0_i32 = arith.constant 0 : i32
    %c0_i32_0 = arith.constant 0 : i32
    %c0_i32_1 = arith.constant 0 : i32
    return %c0_i32, %c0_i32_0 : i32, i32
  }
  func.func @transform_5(%arg0: i32) -> (i32, i32) {
    %c0_i32 = arith.constant 0 : i32
    %c0_i32_0 = arith.constant 0 : i32
    %c0_i32_1 = arith.constant 0 : i32
    return %c0_i32, %c0_i32_0 : i32, i32
  }
  func.func @transform_6(%arg0: i32) -> (i32, i32, i32) {
    %c0_i32 = arith.constant 0 : i32
    %c0_i32_0 = arith.constant 0 : i32
    %c0_i32_1 = arith.constant 0 : i32
    return %arg0, %c0_i32, %c0_i32_0 : i32, i32, i32
  }
}

</mosaic_0001>

<bundles_post_ra>
// kernel: _lambda_.1
= control target key start
LH: loop header
LB: loop body
LE: loop exit
PB: predicated region body
PF: predicated region fallthrough
CT: control target
= control target key end

     0   :  { %11 = vsyncpa [#allocation3], 0  ;;  %s7002_s0 = inlined_call_operand.vmem [shape: bf16[2,4,8,30], index: 0, kind: input, shape index: {}]   ;;  %s7003_s1 = inlined_call_operand.vmem [shape: bf16[9,30,384], index: 1, kind: input, shape index: {}]   ;;  %s7004_s2 = inlined_call_operand.vmem [shape: bf16[6,384,256], index: 2, kind: input, shape index: {}]   ;;  %s7005_s3 = inlined_call_operand.vmem [shape: f32[1,256], index: 3, kind: input, shape index: {}]   ;;  %s7006_s4 = inlined_call_operand.vmem [shape: bf16[256,3], index: 4, kind: input, shape index: {}]   ;;  %s7007_s5 = inlined_call_operand.vmem [shape: f32[1,3], index: 5, kind: input, shape index: {}]   ;;  %s7008_s6 = inlined_call_operand.hbm [shape: f32[2,1,3], index: 6, kind: output, shape index: {}]  }
   0x1   :  { %13 = vsyncpa [#allocation3 + $0x1], 0  ;;  %s5642_s21 = smov 0   ;;  %s5644_s22 = smov 0  }
   0x2   :  { %s5646_s23 = smov 0   ;;  %s5648_s24 = smov 0  }
   0x3 LB: > { %s5663_s25 = sadd.s32 4294967295, %s5600_s24   ;;  %s4128_s26 = sadd.s32 4294967294, %s5600_s24   ;;  %s5600_s24 = sphi %s5648_s24, %s7014_s24   ;;  %s5596_s23 = sphi %s5646_s23, %s7013_s23   ;;  %s5592_s22 = sphi %s5644_s22, %s7012_s22   ;;  %s5588_s21 = sphi %s5642_s21, %s7011_s21  }
   0x4   : > { %s5667_s27 = sadd.s32 1, %s5600_s24   ;;  %s157_s28 = sadd.s32 1, %s5596_s23 }
   0x5   : > { %s154_s29 = ssub.s32 %s5600_s24, %s5667_s27  ;;  %p167_p0 = scmp.ne.s32.totalorder %s5596_s23, %s5592_s22 }
   0x6   : > { %p155_p1 = scmp.eq.s32.totalorder %s154_s29, 0  ;;  %p168_p2 = scmp.eq.s32.totalorder %s5663_s25, 1 }
   0x7   : > { %p173_p3 = scmp.ne.s32.totalorder %s5592_s22, %s5588_s21  ;;  %p174_p4 = scmp.eq.s32.totalorder %s4128_s26, 1 }
   0x8   : > { %s5678_s30 = scalar_select %p155_p1, %s5596_s23, %s157_s28  }
   0x9   : > { %p5680_p5 = por %p168_p2, %p167_p0  ;;  %p5684_p6 = por %p174_p4, %p173_p3 }
   0xa   : > { %p4131_p7 = scmp.ge.s32.totalorder %s5600_s24, 1  ;;  %p215_p8 = scmp.lt.s32.totalorder %s5600_s24, 3 }
   0xc   : > { %p216_p9 = pnand %p4131_p7, %p215_p8 }
   0xd   : > { %v5018_v0 = vld [vmem:[%s7003_s1 + $0x4] ss:$12 sps:$4 sm:$0xff] (!%p216_p9)   ;;  %vm292_vm0 = vcmask (!%p216_p9), 1046528   ;;  %v5602_v2 = vmov (!%p216_p9), 0   ;;  %p244_p10 = scmp.lt.s32.totalorder (!%p216_p9), %s5663_s25, 1  ;;  %vm288_vm1 = vcmask (!%p216_p9), 244736  }
   0xe   : > { %219 = sbr.rel (%p216_p9) target bundleno = 977 (0x3d1), region = 44  ;;  %v5020_v1 = vld [vmem:[%s7003_s1 + $0x64] ss:$12 sps:$4 sm:$0xff] (!%p216_p9)   ;;  %334 = vmatprep.mubr.bf16.mxu1 (!%p216_p9), %v5602_v2  ;;  %606 = vmatprep.mubr.bf16.mxu0 (!%p216_p9), %v5602_v2  ;;  %v5022_v3 = vld [vmem:[%s7003_s1] ss:$12 sps:$4 sm:$0xff] (!%p216_p9)   ;;  %v5603_v15 = vmov (!%p216_p9), 0.0  }
   0xf   : > { %302 = vmatprep.subr.bf16.mxu1 (!%p216_p9), %v5018_v0  ;;  %v5023_v4 = vld [vmem:[%s7003_s1 + $0x60] ss:$12 sps:$4 sm:$0xff] (!%p216_p9)   ;;  %574 = vmatprep.subr.bf16.mxu0 (!%p216_p9), %v5020_v1  ;;  %v5024_v5 = vld [vmem:[%s7003_s1 + $0x1c] ss:$12 sps:$4 sm:$0x7f] (!%p216_p9)   ;;  %vm5604_vm2 = vmmov (!%p216_p9), 0  }
  0x10   : > { %303 = vmatpush1.bf16.msra.mxu1 (!%p216_p9), %v5022_v3  ;;  %575 = vmatpush1.bf16.msra.mxu0 (!%p216_p9), %v5023_v4  ;;  %v5026_v6 = vld [vmem:[%s7003_s1 + $0x7c] ss:$12 sps:$4 sm:$0x7f] (!%p216_p9)   ;;  %v5028_v7 = vld [vmem:[%s7003_s1 + $0x18] ss:$12 sps:$4 sm:$0x7f] (!%p216_p9)  }
  0x11   : > { %4140 = vmatprep.subr.msk.bf16.mxu1 (!%p216_p9), %vm292_vm0, %v5024_v5  ;;  %v5029_v8 = vld [vmem:[%s7003_s1 + $0x78] ss:$12 sps:$4 sm:$0x7f] (!%p216_p9)   ;;  %4176 = vmatprep.subr.msk.bf16.mxu0 (!%p216_p9), %vm292_vm0, %v5026_v6  ;;  %v5030_v9 = vld [vmem:[%s7003_s1 + $0x90] ss:$12 sps:$4 sm:$0xff] (!%p216_p9)   ;;  %v294_v10 = vsel (!%p216_p9), %vm292_vm0, %v5028_v7, 0 }
  0x12   : > { %v566_v11 = vsel (!%p216_p9), %vm292_vm0, %v5029_v8, 0  ;;  %v5032_v12 = vld [vmem:[%s7003_s1 + $0x94] ss:$12 sps:$4 sm:$0xff] (!%p216_p9)   ;;  %v5034_v17 = vld [vmem:[%s7003_s1 + $0xac] ss:$12 sps:$4 sm:$0x7f] (!%p216_p9)  }
  0x13   : > { %v5033_v16 = vld [vmem:[%s7003_s1 + $0x8] ss:$12 sps:$4 sm:$0xff] (!%p216_p9)   ;;  %v5036_v18 = vld [vmem:[%s7003_s1 + $0x20] ss:$12 sps:$4 sm:$0x7f] (!%p216_p9)   ;;  %s242_s13 = sand.u32 (!%p216_p9), 1, %s5592_s22  }
  0x14   : > { %305 = vmatpush1.bf16.msra.mxu1 (!%p216_p9), %v294_v10  ;;  %577 = vmatpush1.bf16.msra.mxu0 (!%p216_p9), %v566_v11  ;;  %v5037_v19 = vld [vmem:[%s7003_s1 + $0xa8] ss:$12 sps:$4 sm:$0x7f] (!%p216_p9)   ;;  %v300_v20 = vsel (!%p216_p9), %vm292_vm0, %v5036_v18, 0  ;;  %v5038_v23 = vld [vmem:[%s7003_s1 + $0x30] ss:$12 sps:$4 sm:$0xff] (!%p216_p9)  }
  0x15   : > { %s245_s26 = scalar_select %p244_p10, %s5663_s25, 1  ;;  %4879 = vmatprep.subr.bf16.mxu1 %v5603_v15  ;;  %710 = vmatprep.subr.bf16.mxu0 %v5032_v12  ;;  %v5040_v21 = vld [vmem:[%s7003_s1 + $0x34] ss:$12 sps:$4 sm:$0xff]   ;;  %v702_v22 = vsel %vm292_vm0, %v5037_v19, 0  ;;  %v5043_v26 = vld [vmem:[%s7003_s1 + $0xc4] ss:$12 sps:$4 sm:$0xff]  }
  0x16   : > { %v5041_v25 = vld [vmem:[%s7003_s1 + $0xc0] ss:$12 sps:$4 sm:$0xff]   ;;  %v5046_v28 = vld [vmem:[%s7003_s1 + $0xdc] ss:$12 sps:$4 sm:$0x7f]   ;;  %s4826_s17 = sshll.u32 %s5663_s25, 4 }
  0x17   : > { %s4829_s11 = sshll.u32 %s245_s26, 4  ;;  %v5044_v27 = vld [vmem:[%s7003_s1 + $0x4c] ss:$12 sps:$4 sm:$0x7f]   ;;  %v5052_v33 = vld [vmem:[%s7003_s1 + $0xf4] ss:$12 sps:$4 sm:$0xff]   ;;  %s6960_s28 = scalar_lea.hbm %s7008_s6, %s4826_s17 }
  0x18   : > { %s5728_s16 = scalar_lea.vmem %s7002_s0, %s4829_s11  ;;  %v5048_v29 = vld [vmem:[%s7003_s1 + $0x48] ss:$12 sps:$4 sm:$0x7f]   ;;  %v5049_v30 = vld [vmem:[%s7003_s1 + $0xd8] ss:$12 sps:$4 sm:$0x7f]  }
  0x19   : > { %v5734_v13 = vld [vmem:[%s5728_s16] sm:$0xf]  ;;  %v5737_v14 = vld [vmem:[%s5728_s16 + $0x8] sm:$0xf]  ;;  %v5770_v24 = vld [vmem:[%s5728_s16 + $0xc] sm:$0xf] }
  0x1a   : > { %4141 = vmatmul.mubr.msk.bf16.vlgmr.msra.gmra.mrb[0].mxu1 %vm288_vm1, %v5734_v13  ;;  %4177 = vmatmul.mubr.msk.bf16.vlgmr.msra.gmra.mrb[0].mxu0 %vm288_vm1, %v5737_v14  ;;  %v430_v31 = vsel %vm292_vm0, %v5048_v29, 0  ;;  %v833_v32 = vsel %vm292_vm0, %v5049_v30, 0  ;;  %v5804_v34 = vld [vmem:[%s5728_s16 + $0x4] sm:$0xf]  ;;  %v5050_v35 = vld [vmem:[%s7003_s1 + $0xf0] ss:$12 sps:$4 sm:$0xff]  }
  0x1b   : > { %4880 = vmatpush3.bf16.msra.mxu1 %v5033_v16  ;;  %711 = vmatpush1.bf16.msra.mxu0 %v5030_v9  ;;  %v5053_v36 = vld [vmem:[%s7003_s1 + $0x38] ss:$12 sps:$4 sm:$0xff]   ;;  %v5056_v38 = vld [vmem:[%s7003_s1 + $0x50] ss:$12 sps:$4 sm:$0x7f]   ;;  %s243_s18 = scalar_lea.vmem [#allocation2], %s242_s13 }
  0x1c   : > { %4881 = vmatprep.subr.bf16.mxu1 %v5603_v15  ;;  %4194 = vmatprep.subr.msk.bf16.mxu0 %vm292_vm0, %v5034_v17  ;;  %v5054_v37 = vld [vmem:[%s7003_s1 + $0x10c] ss:$12 sps:$4 sm:$0x7f]   ;;  %v5057_v39 = vld [vmem:[%s7003_s1 + $0x108] ss:$12 sps:$4 sm:$0x7f]  }
  0x1d   : > { %4883 = vmatprep.mubr.msk.bf16.mxu1 %vm5604_vm2, %v5603_v15  ;;  %742 = vmatprep.mubr.bf16.mxu0 %v5602_v2  ;;  %v436_v40 = vsel %vm292_vm0, %v5056_v38, 0  ;;  %v973_v41 = vsel %vm292_vm0, %v5057_v39, 0  ;;  %v5060_v42 = vld [vmem:[%s7003_s1 + $0x124] ss:$12 sps:$4 sm:$0xff]   ;;  %v5058_v43 = vld [vmem:[%s7003_s1 + $0x120] ss:$12 sps:$4 sm:$0xff]  }
  0x1e   : > { %v5061_v44 = vld [vmem:[%s7003_s1 + $0x68] ss:$12 sps:$4 sm:$0xff]   ;;  %v5064_v46 = vld [vmem:[%s7003_s1 + $0x80] ss:$12 sps:$4 sm:$0x7f]   ;;  %s4073_s19 = sshll.u32 %s243_s18, 4  ;;  %s6962_s19 = int_to_ptr.vmem [resolvable:$true] %s4073_s19 }
  0x1f   : > { %4882 = vmatpush3.bf16.msra.mxu1 %v300_v20  ;;  %713 = vmatpush1.bf16.msra.mxu0 %v702_v22  ;;  %v5062_v45 = vld [vmem:[%s7003_s1 + $0x13c] ss:$12 sps:$4 sm:$0x7f]   ;;  %v5065_v47 = vld [vmem:[%s7003_s1 + $0x138] ss:$12 sps:$4 sm:$0x7f]  }
  0x20   : > { %438 = vmatprep.subr.bf16.mxu1 %v5040_v21  ;;  %841 = vmatprep.subr.bf16.mxu0 %v5043_v26  ;;  %v5068_v48 = vld [vmem:[%s7003_s1 + $0x154] ss:$12 sps:$4 sm:$0xff]   ;;  %v572_v49 = vsel %vm292_vm0, %v5064_v46, 0  ;;  %v1113_v50 = vsel %vm292_vm0, %v5065_v47, 0  ;;  %v5066_v51 = vld [vmem:[%s7003_s1 + $0x150] ss:$12 sps:$4 sm:$0xff]  }
  0x21   : > { %v5070_v52 = vld [vmem:[%s7003_s1 + $0x16c] ss:$12 sps:$4 sm:$0x7f]   ;;  %v5072_v53 = vld [vmem:[%s7003_s1 + $0xb0] ss:$12 sps:$4 sm:$0x7f]  }
  0x22   : > { %4884 = vmatmul.mubr.msk.bf16.vlgmr.msra.gmra.mrb[4].mxu1 %vm288_vm1, %v5734_v13  ;;  %4195 = vmatmul.mubr.msk.bf16.vlgmr.msra.gmra.mrb[4].mxu0 %vm288_vm1, %v5770_v24  ;;  %v5073_v54 = vld [vmem:[%s7003_s1 + $0x168] ss:$12 sps:$4 sm:$0x7f]   ;;  %v5069_v55 = vld [vmem:[%s7003_s1 + $0x98] ss:$12 sps:$4 sm:$0xff]   ;;  %v708_v57 = vsel %vm292_vm0, %v5072_v53, 0 }
  0x23   : > { %439 = vmatpush1.bf16.msra.mxu1 %v5038_v23  ;;  %842 = vmatpush1.bf16.msra.mxu0 %v5041_v25  ;;  %v5076_v56 = vld [vmem:[%s7003_s1 + $0x184] ss:$12 sps:$4 sm:$0xff]   ;;  %v1253_v58 = vsel %vm292_vm0, %v5073_v54, 0  ;;  %v5074_v59 = vld [vmem:[%s7003_s1 + $0x180] ss:$12 sps:$4 sm:$0xff]   ;;  %vm4058_vm3 = vcmask 16384  }
  0x24   : > { %4158 = vmatprep.subr.msk.bf16.mxu1 %vm292_vm0, %v5044_v27  ;;  %4211 = vmatprep.subr.msk.bf16.mxu0 %vm292_vm0, %v5046_v28  ;;  %v5077_v60 = vld [vmem:[%s7003_s1 + $0xc8] ss:$12 sps:$4 sm:$0xff]   ;;  %v5080_v62 = vld [vmem:[%s7003_s1 + $0xe0] ss:$12 sps:$4 sm:$0x7f]   ;;  %s4061_s29 = scalar_lea.sflag [#allocation3], %s242_s13 }
  0x25   : > { %470 = vmatprep.mubr.bf16.mxu1 %v5602_v2  ;;  %873 = vmatprep.mubr.bf16.mxu0 %v5602_v2  ;;  %v5078_v61 = vld [vmem:[%s7003_s1 + $0x19c] ss:$12 sps:$4 sm:$0x7f]   ;;  %v5081_v63 = vld [vmem:[%s7003_s1 + $0x198] ss:$12 sps:$4 sm:$0x7f]  }
  0x26   : > { %v5092_v0 = vld [vmem:[%s7004_s2 + $0x4] ss:$8 sps:$4 sm:$0xff]   ;;  %v839_v1 = vsel %vm292_vm0, %v5080_v62, 0  ;;  %v1393_v3 = vsel %vm292_vm0, %v5081_v63, 0  ;;  %v5090_v6 = vld [vmem:[%s7004_s2] ss:$8 sps:$4 sm:$0xff]  }
  0x27   : > { %441 = vmatpush1.bf16.msra.mxu1 %v430_v31  ;;  %844 = vmatpush1.bf16.msra.mxu0 %v833_v32  ;;  %v5082_v4 = vld [vmem:[%s7003_s1 + $0xf8] ss:$12 sps:$4 sm:$0xff]   ;;  %v5083_v5 = vld [vmem:[%s7003_s1 + $0x110] ss:$12 sps:$4 sm:$0x7f]   ;;  %s5538_s25 = scalar_lea.vmem %s6962_s19, 16 }
  0x28   : > { %4887 = vmatprep.subr.bf16.mxu1 %v5603_v15  ;;  %981 = vmatprep.subr.bf16.mxu0 %v5052_v33  ;;  %v5098_v7 = vld [vmem:[%s7004_s2 + $0x14] ss:$8 sps:$4 sm:$0xff]   ;;  %v5096_v8 = vld [vmem:[%s7004_s2 + $0x10] ss:$8 sps:$4 sm:$0xff]   ;;  %v979_v9 = vsel %vm292_vm0, %v5083_v5, 0  ;;  %p5539_p11 = scmp.ne.s32.totalorder %s6962_s19, %s5538_s25  ;;  %s5606_s9 = smov [#allocation2]  }
  0x29   : > { %v5084_v10 = vld [vmem:[%s7003_s1 + $0x128] ss:$12 sps:$4 sm:$0xff]   ;;  %v5085_v11 = vld [vmem:[%s7003_s1 + $0x140] ss:$12 sps:$4 sm:$0x7f]   ;;  %s5542_s16 = sshll.u32 %s5606_s9, 4  ;;  %s5543_s16 = int_to_ptr.vmem [resolvable:$false] %s5542_s16 }
  0x2a   : > { %4159 = vmatmul.mubr.msk.bf16.vlgmr.msra.gmra.mrb[8].mxu1 %vm288_vm1, %v5804_v34  ;;  %4212 = vmatmul.mubr.msk.bf16.vlgmr.msra.gmra.mrb[8].mxu0 %vm288_vm1, %v5734_v13  ;;  %v1119_v12 = vsel %vm292_vm0, %v5085_v11, 0  ;;  %v5086_v16 = vld [vmem:[%s7003_s1 + $0x158] ss:$12 sps:$4 sm:$0xff]   ;;  %v5087_v17 = vld [vmem:[%s7003_s1 + $0x170] ss:$12 sps:$4 sm:$0x7f]   ;;  %p5540_p12 = pnand %p5539_p11, %p5680_p5  ;;  %p5545_p0 = scmp.lt.s32.totalorder %s6962_s19, %s5543_s16 }
  0x2b   : > { %4888 = vmatpush3.bf16.msra.mxu1 %v5053_v36  ;;  %982 = vmatpush1.bf16.msra.mxu0 %v5050_v35  ;;  %v1259_v18 = vsel %vm292_vm0, %v5087_v17, 0  ;;  %v5088_v19 = vld [vmem:[%s7003_s1 + $0x188] ss:$12 sps:$4 sm:$0xff]   ;;  %v5089_v20 = vld [vmem:[%s7003_s1 + $0x1a0] ss:$12 sps:$4 sm:$0x7f]  }
  0x2c   : > { %4889 = vmatprep.subr.bf16.mxu1 %v5603_v15  ;;  %4228 = vmatprep.subr.msk.bf16.mxu0 %vm292_vm0, %v5054_v37  ;;  %v1399_v21 = vsel %vm292_vm0, %v5089_v20, 0  ;;  %v5093_v22 = vld [vmem:[%s7004_s2 + $0x180] ss:$8 sps:$4 sm:$0xff]   ;;  %v5101_v23 = vld [vmem:[%s7004_s2 + $0x194] ss:$8 sps:$4 sm:$0xff]   ;;  %p5541_p13 = pneg %p5540_p12  ;;  %s5544_s10 = scalar_lea.vmem %s5543_s16, 32 }
  0x2d   : > { %4891 = vmatprep.mubr.msk.bf16.mxu1 %vm5604_vm2, %v5603_v15  ;;  %1013 = vmatprep.mubr.bf16.mxu0 %v5602_v2  ;;  %v5102_v25 = vld [vmem:[%s7004_s2 + $0x20] ss:$8 sps:$4 sm:$0xff]   ;;  %v5107_v26 = vld [vmem:[%s7004_s2 + $0x1a4] ss:$8 sps:$4 sm:$0xff]   ;;  %v5110_v27 = vld [vmem:[%s7004_s2 + $0x34] ss:$8 sps:$4 sm:$0xff]   ;;  %p5546_p1 = scmp.lt.s32.totalorder %s5544_s10, %s5538_s25 }
  0x2e   : > { %v5108_v28 = vld [vmem:[%s7004_s2 + $0x30] ss:$8 sps:$4 sm:$0xff]   ;;  %v5113_v29 = vld [vmem:[%s7004_s2 + $0x1b4] ss:$8 sps:$4 sm:$0xff]   ;;  %v5116_v31 = vld [vmem:[%s7004_s2 + $0x44] ss:$8 sps:$4 sm:$0xff]  }
  0x2f   : > { %4890 = vmatpush3.bf16.msra.mxu1 %v436_v40  ;;  %984 = vmatpush1.bf16.msra.mxu0 %v973_v41  ;;  %v5111_v30 = vld [vmem:[%s7004_s2 + $0x1b0] ss:$8 sps:$4 sm:$0xff]   ;;  %v5114_v32 = vld [vmem:[%s7004_s2 + $0x40] ss:$8 sps:$4 sm:$0xff]   ;;  %v5119_v33 = vld [vmem:[%s7004_s2 + $0x1c4] ss:$8 sps:$4 sm:$0xff]   ;;  %p5547_p2 = por %p5546_p1, %p5545_p0 }
  0x30   : > { %4895 = vmatprep.subr.bf16.mxu1 %v5603_v15  ;;  %1121 = vmatprep.subr.bf16.mxu0 %v5060_v42  ;;  %v5122_v35 = vld [vmem:[%s7004_s2 + $0x54] ss:$8 sps:$4 sm:$0xff]   ;;  %v5120_v36 = vld [vmem:[%s7004_s2 + $0x50] ss:$8 sps:$4 sm:$0xff]   ;;  %v5128_v39 = vld [vmem:[%s7004_s2 + $0x64] ss:$8 sps:$4 sm:$0xff]  }
  0x31   : > { %v5125_v37 = vld [vmem:[%s7004_s2 + $0x1d4] ss:$8 sps:$4 sm:$0xff]   ;;  %v5123_v38 = vld [vmem:[%s7004_s2 + $0x1d0] ss:$8 sps:$4 sm:$0xff]   ;;  %v5126_v40 = vld [vmem:[%s7004_s2 + $0x60] ss:$8 sps:$4 sm:$0xff]   ;;  %p5548_p3 = pnand %p5547_p2, %p5541_p13 }
  0x32   : > { %4892 = vmatmul.mubr.msk.bf16.vlgmr.msra.gmra.mrb[12].mxu1 %vm288_vm1, %v5804_v34  ;;  %4229 = vmatmul.mubr.msk.bf16.vlgmr.msra.gmra.mrb[12].mxu0 %vm288_vm1, %v5804_v34  ;;  %v5131_v41 = vld [vmem:[%s7004_s2 + $0x1e4] ss:$8 sps:$4 sm:$0xff]   ;;  %v5129_v42 = vld [vmem:[%s7004_s2 + $0x1e0] ss:$8 sps:$4 sm:$0xff]   ;;  %v5135_v46 = vld [vmem:[%s7004_s2 + $0x1f0] ss:$8 sps:$4 sm:$0xff]  }
  0x33   : > { %4896 = vmatpush3.bf16.msra.mxu1 %v5061_v44  ;;  %1122 = vmatpush1.bf16.msra.mxu0 %v5058_v43  ;;  %v5134_v43 = vld [vmem:[%s7004_s2 + $0x74] ss:$8 sps:$4 sm:$0xff]   ;;  %v5132_v44 = vld [vmem:[%s7004_s2 + $0x70] ss:$8 sps:$4 sm:$0xff]   ;;  %v5140_v47 = vld [vmem:[%s7004_s2 + $0x84] ss:$8 sps:$4 sm:$0xff]  }
  0x34   : > { %4897 = vmatprep.subr.bf16.mxu1 %v5603_v15  ;;  %4245 = vmatprep.subr.msk.bf16.mxu0 %vm292_vm0, %v5062_v45  ;;  %v5137_v45 = vld [vmem:[%s7004_s2 + $0x1f4] ss:$8 sps:$4 sm:$0xff]   ;;  %v5147_v53 = vld [vmem:[%s7004_s2 + $0x210] ss:$8 sps:$4 sm:$0xff]   ;;  %v5164_v63 = vld [vmem:[%s7004_s2 + $0xc4] ss:$8 sps:$4 sm:$0xff]  }
  0x35   : > { %4899 = vmatprep.mubr.msk.bf16.mxu1 %vm5604_vm2, %v5603_v15  ;;  %1153 = vmatprep.mubr.bf16.mxu0 %v5602_v2  ;;  %v5149_v54 = vld [vmem:[%s7004_s2 + $0x214] ss:$8 sps:$4 sm:$0xff]   ;;  %v5168_v5 = vld [vmem:[%s7004_s2 + $0xd0] ss:$8 sps:$4 sm:$0xff]   ;;  %v5177_v11 = vld [vmem:[%s7004_s2 + $0x260] ss:$8 sps:$4 sm:$0xff]  }
  0x36   : > { %v5161_v62 = vld [vmem:[%s7004_s2 + $0x234] ss:$8 sps:$4 sm:$0xff]   ;;  %v5191_v20 = vld [vmem:[%s7004_s2 + $0x284] ss:$8 sps:$4 sm:$0xff]  }
  0x37   : > { %4898 = vmatpush3.bf16.msra.mxu1 %v572_v49  ;;  %1124 = vmatpush1.bf16.msra.mxu0 %v1113_v50  ;;  %v5143_v49 = vld [vmem:[%s7004_s2 + $0x204] ss:$8 sps:$4 sm:$0xff]   ;;  %v5141_v50 = vld [vmem:[%s7004_s2 + $0x200] ss:$8 sps:$4 sm:$0xff]   ;;  %v5185_v17 = vld [vmem:[%s7004_s2 + $0x274] ss:$8 sps:$4 sm:$0xff]  }
  0x38   : > { %4903 = vmatprep.subr.bf16.mxu1 %v5603_v15  ;;  %1261 = vmatprep.subr.bf16.mxu0 %v5068_v48  ;;  %v5138_v48 = vld [vmem:[%s7004_s2 + $0x80] ss:$8 sps:$4 sm:$0xff]  }
  0x3a   : > { %4900 = vmatmul.mubr.msk.bf16.vlgmr.msra.gmra.mrb[16].mxu1 %vm288_vm1, %v5737_v14  ;;  %4246 = vmatmul.mubr.msk.bf16.vlgmr.msra.gmra.mrb[16].mxu0 %vm288_vm1, %v5737_v14 }
  0x3b   : > { %4904 = vmatpush3.bf16.msra.mxu1 %v5069_v55  ;;  %1262 = vmatpush1.bf16.msra.mxu0 %v5066_v51  ;;  %v5146_v51 = vld [vmem:[%s7004_s2 + $0x94] ss:$8 sps:$4 sm:$0xff]   ;;  %v5152_v55 = vld [vmem:[%s7004_s2 + $0xa4] ss:$8 sps:$4 sm:$0xff]  }
  0x3c   : > { %4905 = vmatprep.subr.bf16.mxu1 %v5603_v15  ;;  %4262 = vmatprep.subr.msk.bf16.mxu0 %vm292_vm0, %v5070_v52  ;;  %v5144_v52 = vld [vmem:[%s7004_s2 + $0x90] ss:$8 sps:$4 sm:$0xff]  }
  0x3d   : > { %4907 = vmatprep.mubr.msk.bf16.mxu1 %vm5604_vm2, %v5603_v15  ;;  %1293 = vmatprep.mubr.bf16.mxu0 %v5602_v2 }
  0x3f   : > { %4906 = vmatpush3.bf16.msra.mxu1 %v708_v57  ;;  %1264 = vmatpush1.bf16.msra.mxu0 %v1253_v58  ;;  %v5155_v57 = vld [vmem:[%s7004_s2 + $0x224] ss:$8 sps:$4 sm:$0xff]   ;;  %v5153_v58 = vld [vmem:[%s7004_s2 + $0x220] ss:$8 sps:$4 sm:$0xff]  }
  0x40   : > { %4911 = vmatprep.subr.bf16.mxu1 %v5603_v15  ;;  %1401 = vmatprep.subr.bf16.mxu0 %v5076_v56  ;;  %v5150_v56 = vld [vmem:[%s7004_s2 + $0xa0] ss:$8 sps:$4 sm:$0xff]  }
  0x42   : > { %4908 = vmatmul.mubr.msk.bf16.vlgmr.msra.gmra.mrb[20].mxu1 %vm288_vm1, %v5770_v24  ;;  %4263 = vmatmul.mubr.msk.bf16.vlgmr.msra.gmra.mrb[20].mxu0 %vm288_vm1, %v5770_v24 }
  0x43   : > { %4912 = vmatpush3.bf16.msra.mxu1 %v5077_v60  ;;  %1402 = vmatpush1.bf16.msra.mxu0 %v5074_v59  ;;  %v5158_v59 = vld [vmem:[%s7004_s2 + $0xb4] ss:$8 sps:$4 sm:$0xff]   ;;  %v5156_v60 = vld [vmem:[%s7004_s2 + $0xb0] ss:$8 sps:$4 sm:$0xff]  }
  0x44   : > { %4913 = vmatprep.subr.bf16.mxu1 %v5603_v15  ;;  %4279 = vmatprep.subr.msk.bf16.mxu0 %vm292_vm0, %v5078_v61  ;;  %v5159_v61 = vld [vmem:[%s7004_s2 + $0x230] ss:$8 sps:$4 sm:$0xff]  }
  0x45   : > { %4915 = vmatprep.mubr.msk.bf16.mxu1 %vm5604_vm2, %v5603_v15  ;;  %1433 = vmatprep.mubr.bf16.mxu0 %v5602_v2 }
  0x47   : > { %4914 = vmatpush3.bf16.msra.mxu1 %v839_v1  ;;  %1404 = vmatpush1.bf16.msra.mxu0 %v1393_v3  ;;  %v5167_v1 = vld [vmem:[%s7004_s2 + $0x244] ss:$8 sps:$4 sm:$0xff]   ;;  %v5165_v3 = vld [vmem:[%s7004_s2 + $0x240] ss:$8 sps:$4 sm:$0xff]  }
  0x48   : > { %4919 = vmatprep.subr.bf16.mxu1 %v5603_v15  ;;  %1786 = vmatprep.subr.bf16.mxu0 %v5092_v0  ;;  %v5162_v0 = vld [vmem:[%s7004_s2 + $0xc0] ss:$8 sps:$4 sm:$0xff]  }
  0x4a   : > { %4916 = vmatmul.mubr.msk.bf16.vlgmr.msra.gmra.mrb[24].mxu1 %vm288_vm1, %v5734_v13  ;;  %4280 = vmatmul.mubr.msk.bf16.vlgmr.msra.gmra.mrb[24].mxu0 %vm288_vm1, %v5734_v13 }
  0x4b   : > { %4920 = vmatpush3.bf16.msra.mxu1 %v5082_v4  ;;  %4923 = vmatprep.mubr.msk.bf16.mxu1 %vm5604_vm2, %v5603_v15  ;;  %v5170_v4 = vld [vmem:[%s7004_s2 + $0xd4] ss:$8 sps:$4 sm:$0xff]  }
  0x4c   : > { %4921 = vmatprep.subr.bf16.mxu1 %v5603_v15  ;;  %1787 = vmatpush1.bf16.msra.mxu0 %v5090_v6  ;;  %v5171_v6 = vld [vmem:[%s7004_s2 + $0x250] ss:$8 sps:$4 sm:$0xff]  }
  0x4d   : > { %1788 = vmatprep.subr.bf16.mxu0 %v5098_v7  ;;  %v5173_v7 = vld [vmem:[%s7004_s2 + $0x254] ss:$8 sps:$4 sm:$0xff]  }
  0x4f   : > { %4922 = vmatpush3.bf16.msra.mxu1 %v979_v9  ;;  %v5174_v9 = vld [vmem:[%s7004_s2 + $0xe0] ss:$8 sps:$4 sm:$0xff]  }
  0x50   : > { %4927 = vmatprep.subr.bf16.mxu1 %v5603_v15  ;;  %1789 = vmatpush1.bf16.msra.mxu0 %v5096_v8  ;;  %v5176_v8 = vld [vmem:[%s7004_s2 + $0xe4] ss:$8 sps:$4 sm:$0xff]  }
  0x52   : > { %4924 = vmatmul.mubr.msk.bf16.vlgmr.msra.gmra.mrb[28].mxu1 %vm288_vm1, %v5804_v34  ;;  %v5117_v34 = vld [vmem:[%s7004_s2 + $0x1c0] ss:$8 sps:$4 sm:$0xff]  }
  0x53   : > { %4928 = vmatpush3.bf16.msra.mxu1 %v5084_v10  ;;  %4931 = vmatprep.mubr.msk.bf16.mxu1 %vm5604_vm2, %v5603_v15  ;;  %v5179_v10 = vld [vmem:[%s7004_s2 + $0x264] ss:$8 sps:$4 sm:$0xff]  }
  0x54   : > { %4929 = vmatprep.subr.bf16.mxu1 %v5603_v15 }
  0x57   : > { %4930 = vmatpush3.bf16.msra.mxu1 %v1119_v12  ;;  %v5182_v12 = vld [vmem:[%s7004_s2 + $0xf4] ss:$8 sps:$4 sm:$0xff]  }
  0x58   : > { %4935 = vmatprep.subr.bf16.mxu1 %v5603_v15 }
  0x5a   : > { %4932 = vmatmul.mubr.msk.bf16.vlgmr.msra.gmra.mrb[32].mxu1 %vm288_vm1, %v5737_v14  ;;  %v5095_v14 = vld [vmem:[%s7004_s2 + $0x184] ss:$8 sps:$4 sm:$0xff]  }
  0x5b   : > { %4936 = vmatpush3.bf16.msra.mxu1 %v5086_v16  ;;  %4939 = vmatprep.mubr.msk.bf16.mxu1 %vm5604_vm2, %v5603_v15  ;;  %v5180_v16 = vld [vmem:[%s7004_s2 + $0xf0] ss:$8 sps:$4 sm:$0xff]  }
  0x5c   : > { %4937 = vmatprep.subr.bf16.mxu1 %v5603_v15 }
  0x5f   : > { %4938 = vmatpush3.bf16.msra.mxu1 %v1259_v18  ;;  %v5183_v18 = vld [vmem:[%s7004_s2 + $0x270] ss:$8 sps:$4 sm:$0xff]  }
  0x60   : > { %4943 = vmatprep.subr.bf16.mxu1 %v5603_v15 }
  0x62   : > { %4940 = vmatmul.mubr.msk.bf16.vlgmr.msra.gmra.mrb[36].mxu1 %vm288_vm1, %v5770_v24  ;;  %v5099_v24 = vld [vmem:[%s7004_s2 + $0x190] ss:$8 sps:$4 sm:$0xff]  }
  0x63   : > { %4944 = vmatpush3.bf16.msra.mxu1 %v5088_v19  ;;  %4947 = vmatprep.mubr.msk.bf16.mxu1 %vm5604_vm2, %v5603_v15  ;;  %v5188_v19 = vld [vmem:[%s7004_s2 + $0x104] ss:$8 sps:$4 sm:$0xff]  }
  0x64   : > { %4945 = vmatprep.subr.bf16.mxu1 %v5603_v15  ;;  %v5104_v15 = vld [vmem:[%s7004_s2 + $0x24] ss:$8 sps:$4 sm:$0xff]  }
  0x65   : > { %1790 = vmatprep.subr.bf16.mxu0 %v5104_v15 }
  0x66   : > { %1791 = vmatpush1.bf16.msra.mxu0 %v5102_v25 }
  0x67   : > { %4946 = vmatpush3.bf16.msra.mxu1 %v1399_v21  ;;  %1792 = vmatprep.subr.bf16.mxu0 %v5110_v27 }
  0x68   : > { %2188 = vmatprep.subr.bf16.mxu1 %v5095_v14 }
  0x6a   : > { %4948 = vmatmul.mubr.msk.bf16.vlgmr.msra.gmra.mrb[40].mxu1 %vm288_vm1, %v5734_v13  ;;  %v5105_v13 = vld [vmem:[%s7004_s2 + $0x1a0] ss:$8 sps:$4 sm:$0xff]   ;;  %1793 = vmatpush1.bf16.msra.mxu0 %v5108_v28 }
  0x6b   : > { %2189 = vmatpush1.bf16.msra.mxu1 %v5093_v22  ;;  %1794 = vmatprep.subr.bf16.mxu0 %v5116_v31 }
  0x6c   : > { %2190 = vmatprep.subr.bf16.mxu1 %v5101_v23 }
  0x6e   : > { %1795 = vmatpush1.bf16.msra.mxu0 %v5114_v32 }
  0x6f   : > { %2191 = vmatpush1.bf16.msra.mxu1 %v5099_v24  ;;  %1796 = vmatprep.subr.bf16.mxu0 %v5122_v35 }
  0x70   : > { %2192 = vmatprep.subr.bf16.mxu1 %v5107_v26 }
  0x72   : > { %1797 = vmatpush1.bf16.msra.mxu0 %v5120_v36 }
  0x73   : > { %2193 = vmatpush1.bf16.msra.mxu1 %v5105_v13  ;;  %1798 = vmatprep.subr.bf16.mxu0 %v5128_v39 }
  0x74   : > { %2194 = vmatprep.subr.bf16.mxu1 %v5113_v29 }
  0x76   : > { %1799 = vmatpush1.bf16.msra.mxu0 %v5126_v40 }
  0x77   : > { %2195 = vmatpush1.bf16.msra.mxu1 %v5111_v30  ;;  %1800 = vmatprep.subr.bf16.mxu0 %v5134_v43 }
  0x78   : > { %2196 = vmatprep.subr.bf16.mxu1 %v5119_v33 }
  0x7a   : > { %1801 = vmatpush1.bf16.msra.mxu0 %v5132_v44 }
  0x7b   : > { %2197 = vmatpush1.bf16.msra.mxu1 %v5117_v34  ;;  %1802 = vmatprep.subr.bf16.mxu0 %v5140_v47 }
  0x7c   : > { %2198 = vmatprep.subr.bf16.mxu1 %v5125_v37 }
  0x7e   : > { %1803 = vmatpush1.bf16.msra.mxu0 %v5138_v48 }
  0x7f   : > { %2199 = vmatpush1.bf16.msra.mxu1 %v5123_v38  ;;  %1804 = vmatprep.subr.bf16.mxu0 %v5146_v51 }
  0x80   : > { %2200 = vmatprep.subr.bf16.mxu1 %v5131_v41 }
  0x82   : > { %1805 = vmatpush1.bf16.msra.mxu0 %v5144_v52 }
  0x83   : > { %2201 = vmatpush1.bf16.msra.mxu1 %v5129_v42  ;;  %1806 = vmatprep.subr.bf16.mxu0 %v5152_v55 }
  0x84   : > { %2202 = vmatprep.subr.bf16.mxu1 %v5137_v45 }
  0x86   : > { %1807 = vmatpush1.bf16.msra.mxu0 %v5150_v56 }
  0x87   : > { %2203 = vmatpush1.bf16.msra.mxu1 %v5135_v46  ;;  %1808 = vmatprep.subr.bf16.mxu0 %v5158_v59 }
  0x88   : > { %2204 = vmatprep.subr.bf16.mxu1 %v5143_v49 }
  0x8a   : > { %1809 = vmatpush1.bf16.msra.mxu0 %v5156_v60 }
  0x8b   : > { %2205 = vmatpush1.bf16.msra.mxu1 %v5141_v50  ;;  %1810 = vmatprep.subr.bf16.mxu0 %v5164_v63 }
  0x8c   : > { %2206 = vmatprep.subr.bf16.mxu1 %v5149_v54 }
  0x8e   : > { %1811 = vmatpush1.bf16.msra.mxu0 %v5162_v0 }
  0x8f   : > { %2207 = vmatpush1.bf16.msra.mxu1 %v5147_v53  ;;  %1812 = vmatprep.subr.bf16.mxu0 %v5170_v4 }
  0x90   : > { %2208 = vmatprep.subr.bf16.mxu1 %v5155_v57 }
  0x92   : > { %1813 = vmatpush1.bf16.msra.mxu0 %v5168_v5 }
  0x93   : > { %2209 = vmatpush1.bf16.msra.mxu1 %v5153_v58  ;;  %1814 = vmatprep.subr.bf16.mxu0 %v5176_v8 }
  0x94   : > { %2210 = vmatprep.subr.bf16.mxu1 %v5161_v62 }
  0x96   : > { %1815 = vmatpush1.bf16.msra.mxu0 %v5174_v9 }
  0x97   : > { %2211 = vmatpush1.bf16.msra.mxu1 %v5159_v61  ;;  %1816 = vmatprep.subr.bf16.mxu0 %v5182_v12 }
  0x98   : > { %2212 = vmatprep.subr.bf16.mxu1 %v5167_v1 }
  0x9a   : > { %1817 = vmatpush1.bf16.msra.mxu0 %v5180_v16 }
  0x9b   : > { %2213 = vmatpush1.bf16.msra.mxu1 %v5165_v3  ;;  %1827 = vmatprep.subr.bf16.mxu0 %v5188_v19 }
  0x9c   : > { %2214 = vmatprep.subr.bf16.mxu1 %v5173_v7 }
  0x9f   : > { %2215 = vmatpush1.bf16.msra.mxu1 %v5171_v6 }
  0xa0   : > { %2216 = vmatprep.subr.bf16.mxu1 %v5179_v10 }
  0xa3   : > { %2217 = vmatpush1.bf16.msra.mxu1 %v5177_v11 }
  0xa4   : > { %2218 = vmatprep.subr.bf16.mxu1 %v5185_v17 }
  0xa7   : > { %2219 = vmatpush1.bf16.msra.mxu1 %v5183_v18 }
  0xa8   : > { %2229 = vmatprep.subr.bf16.mxu1 %v5191_v20 }
  0xed   : > { %v336_v14 = vpop.f32.mrb[0].mxu1  ;;  %v608_v21 = vpop.f32.mrb[0].mxu0 }
  0xee   : > { %v338_v22 = vpop.f32.mrb[1].mxu1  ;;  %v610_v23 = vpop.f32.mrb[1].mxu0 }
  0xef   : > { %v340_v24 = vpop.f32.mrb[2].mxu1  ;;  %v612_v15 = vpop.f32.mrb[2].mxu0 }
  0xf0   : > { %v341_v25 = vpop.f32.mrb[3].mxu1  ;;  %v613_v26 = vpop.f32.mrb[3].mxu0 }
  0xf5   : > { %v377_v13 = vpop.f32.mrb[4].mxu1  ;;  %v744_v27 = vpop.f32.mrb[4].mxu0 }
  0xf6   : > { %v4885_v28 = vpop.f32.mrb[5].mxu1  ;;  %v746_v29 = vpop.f32.mrb[5].mxu0 }
  0xf7   : > { %v380_v30 = vpop.f32.mrb[6].mxu1  ;;  %v748_v31 = vpop.f32.mrb[6].mxu0 }
  0xf8   : > { %v4886_v32 = vpop.f32.mrb[7].mxu1  ;;  %v749_v33 = vpop.f32.mrb[7].mxu0 }
  0xfd   : > { %v472_v34 = vpop.f32.mrb[8].mxu1  ;;  %v875_v35 = vpop.f32.mrb[8].mxu0 }
  0xfe   : > { %v519_v36 = vadd.f32 %v472_v34, %v336_v14  ;;  %v474_v37 = vpop.f32.mrb[9].mxu1  ;;  %v877_v38 = vpop.f32.mrb[9].mxu0  ;;  %v925_v47 = vrot.slane %v875_v35, 1 }
  0xff   : > { %v520_v39 = vadd.f32 %v474_v37, %v338_v22  ;;  %v476_v40 = vpop.f32.mrb[10].mxu1  ;;  %v879_v41 = vpop.f32.mrb[10].mxu0  ;;  %v926_v49 = vrot.slane %v877_v38, 1 }
 0x100   : > { %v655_v42 = vadd.f32 %v608_v21, %v519_v36  ;;  %v477_v43 = vpop.f32.mrb[11].mxu1  ;;  %v880_v44 = vpop.f32.mrb[11].mxu0 }
 0x101   : > { %v656_v45 = vadd.f32 %v610_v23, %v520_v39  ;;  %v5186_v44 = vld [vmem:[%s7004_s2 + $0x100] ss:$8 sps:$4 sm:$0xff]  }
 0x102   : > { %v791_v46 = vadd.f32 %v744_v27, %v655_v42 }
 0x103   : > { %v792_v48 = vadd.f32 %v746_v29, %v656_v45  ;;  %v5194_v45 = vld [vmem:[%s7004_s2 + $0x114] ss:$8 sps:$4 sm:$0xff]  }
 0x104   : > { %v931_v50 = vadd.f32 %v925_v47, %v791_v46 }
 0x105   : > { %v932_v51 = vadd.f32 %v926_v49, %v792_v48  ;;  %v513_v52 = vpop.f32.mrb[12].mxu1  ;;  %v1015_v53 = vpop.f32.mrb[12].mxu0  ;;  %v5189_v48 = vld [vmem:[%s7004_s2 + $0x280] ss:$8 sps:$4 sm:$0xff]  }
 0x106   : > { %v521_v54 = vadd.f32 %v513_v52, %v377_v13  ;;  %v1065_v55 = vrot.slane %v1015_v53, 1  ;;  %v4893_v56 = vpop.f32.mrb[13].mxu1  ;;  %v1017_v57 = vpop.f32.mrb[13].mxu0  ;;  %v5197_v52 = vld [vmem:[%s7004_s2 + $0x294] ss:$8 sps:$4 sm:$0xff]  }
 0x107   : > { %v1066_v58 = vrot.slane %v1017_v57, 1  ;;  %v516_v59 = vpop.f32.mrb[14].mxu1  ;;  %v1019_v60 = vpop.f32.mrb[14].mxu0  ;;  %v5200_v57 = vld [vmem:[%s7004_s2 + $0x124] ss:$8 sps:$4 sm:$0xff]  }
 0x108   : > { %v1071_v61 = vadd.f32 %v1065_v55, %v931_v50  ;;  %v4894_v62 = vpop.f32.mrb[15].mxu1  ;;  %v1020_v63 = vpop.f32.mrb[15].mxu0  ;;  %v5203_v59 = vld [vmem:[%s7004_s2 + $0x2a4] ss:$8 sps:$4 sm:$0xff]   ;;  %v5198_v60 = vld [vmem:[%s7004_s2 + $0x120] ss:$8 sps:$4 sm:$0xff]  }
 0x109   : > { %v1072_v0 = vadd.f32 %v1066_v58, %v932_v51  ;;  %v5195_v58 = vld [vmem:[%s7004_s2 + $0x290] ss:$8 sps:$4 sm:$0xff]   ;;  %v5201_v63 = vld [vmem:[%s7004_s2 + $0x2a0] ss:$8 sps:$4 sm:$0xff]  }
 0x10d   : > { %v649_v1 = vpop.f32.mrb[16].mxu1  ;;  %v1155_v3 = vpop.f32.mrb[16].mxu0 }
 0x10e   : > { %v657_v4 = vadd.f32 %v649_v1, %v521_v54  ;;  %v1205_v5 = vrot.slane %v1155_v3, 1  ;;  %v4901_v6 = vpop.f32.mrb[17].mxu1  ;;  %v1157_v7 = vpop.f32.mrb[17].mxu0  ;;  %v5192_v54 = vld [vmem:[%s7004_s2 + $0x110] ss:$8 sps:$4 sm:$0xff]  }
 0x10f   : > { %v1206_v8 = vrot.slane %v1157_v7, 1  ;;  %v652_v9 = vpop.f32.mrb[18].mxu1  ;;  %v1159_v10 = vpop.f32.mrb[18].mxu0  ;;  %v5209_v3 = vld [vmem:[%s7004_s2 + $0x2b4] ss:$8 sps:$4 sm:$0xff]  }
 0x110   : > { %v1211_v11 = vadd.f32 %v1205_v5, %v1071_v61  ;;  %v4902_v12 = vpop.f32.mrb[19].mxu1  ;;  %v1160_v16 = vpop.f32.mrb[19].mxu0  ;;  %v5206_v61 = vld [vmem:[%s7004_s2 + $0x134] ss:$8 sps:$4 sm:$0xff]   ;;  %v5204_v5 = vld [vmem:[%s7004_s2 + $0x130] ss:$8 sps:$4 sm:$0xff]  }
 0x111   : > { %v1212_v17 = vadd.f32 %v1206_v8, %v1072_v0  ;;  %v5212_v8 = vld [vmem:[%s7004_s2 + $0x144] ss:$8 sps:$4 sm:$0xff]   ;;  %v5207_v9 = vld [vmem:[%s7004_s2 + $0x2b0] ss:$8 sps:$4 sm:$0xff]   ;;  %v5218_v12 = vld [vmem:[%s7004_s2 + $0x154] ss:$8 sps:$4 sm:$0xff]  }
 0x112   : > { %v5215_v10 = vld [vmem:[%s7004_s2 + $0x2c4] ss:$8 sps:$4 sm:$0xff]  }
 0x115   : > { %v785_v18 = vpop.f32.mrb[20].mxu1  ;;  %v1295_v19 = vpop.f32.mrb[20].mxu0 }
 0x116   : > { %v793_v20 = vadd.f32 %v785_v18, %v657_v4  ;;  %v1345_v14 = vrot.slane %v1295_v19, 1  ;;  %v4909_v21 = vpop.f32.mrb[21].mxu1  ;;  %v1297_v22 = vpop.f32.mrb[21].mxu0 }
 0x117   : > { %v1346_v23 = vrot.slane %v1297_v22, 1  ;;  %v788_v24 = vpop.f32.mrb[22].mxu1  ;;  %v1299_v15 = vpop.f32.mrb[22].mxu0  ;;  %v5216_v21 = vld [vmem:[%s7004_s2 + $0x150] ss:$8 sps:$4 sm:$0xff]  }
 0x118   : > { %v1351_v25 = vadd.f32 %v1345_v14, %v1211_v11  ;;  %v4910_v26 = vpop.f32.mrb[23].mxu1  ;;  %v1300_v13 = vpop.f32.mrb[23].mxu0  ;;  %v5210_v11 = vld [vmem:[%s7004_s2 + $0x140] ss:$8 sps:$4 sm:$0xff]   ;;  %v5224_v24 = vld [vmem:[%s7004_s2 + $0x164] ss:$8 sps:$4 sm:$0xff]  }
 0x119   : > { %v1352_v27 = vadd.f32 %v1346_v23, %v1212_v17  ;;  %v5213_v17 = vld [vmem:[%s7004_s2 + $0x2c0] ss:$8 sps:$4 sm:$0xff]   ;;  %v5219_v15 = vld [vmem:[%s7004_s2 + $0x2d0] ss:$8 sps:$4 sm:$0xff]   ;;  %v5230_v13 = vld [vmem:[%s7004_s2 + $0x174] ss:$8 sps:$4 sm:$0xff]  }
 0x11a   : > { %v5222_v26 = vld [vmem:[%s7004_s2 + $0x160] ss:$8 sps:$4 sm:$0xff]  }
 0x11d   : > { %v916_v28 = vpop.f32.mrb[24].mxu1  ;;  %v1435_v29 = vpop.f32.mrb[24].mxu0 }
 0x11e   : > { %v927_v30 = vrot.slane %v916_v28, 1  ;;  %v1485_v31 = vrot.slane %v1435_v29, 2  ;;  %v4917_v32 = vpop.f32.mrb[25].mxu1  ;;  %v1437_v33 = vpop.f32.mrb[25].mxu0  ;;  %v5225_v28 = vld [vmem:[%s7004_s2 + $0x2e0] ss:$8 sps:$4 sm:$0xff]  }
 0x11f   : > { %v1486_v34 = vrot.slane %v1437_v33, 2  ;;  %v919_v35 = vpop.f32.mrb[26].mxu1  ;;  %v1439_v36 = vpop.f32.mrb[26].mxu0  ;;  %v5228_v33 = vld [vmem:[%s7004_s2 + $0x170] ss:$8 sps:$4 sm:$0xff]  }
 0x120   : > { %v933_v37 = vadd.f32 %v927_v30, %v793_v20  ;;  %v1491_v38 = vadd.f32 %v1485_v31, %v1351_v25  ;;  %v4918_v39 = vpop.f32.mrb[27].mxu1  ;;  %v1440_v40 = vpop.f32.mrb[27].mxu0  ;;  %v5221_v20 = vld [vmem:[%s7004_s2 + $0x2d4] ss:$8 sps:$4 sm:$0xff]   ;;  %v5227_v25 = vld [vmem:[%s7004_s2 + $0x2e4] ss:$8 sps:$4 sm:$0xff]  }
 0x121   : > { %v1492_v41 = vadd.f32 %v1486_v34, %v1352_v27  ;;  %v5233_v31 = vld [vmem:[%s7004_s2 + $0x2f4] ss:$8 sps:$4 sm:$0xff]   ;;  %v5236_v36 = vld [vmem:[%s7004_s2 + $0x304] ss:$8 sps:$4 sm:$0xff]   ;;  %v5234_v40 = vld [vmem:[%s7004_s2 + $0x300] ss:$8 sps:$4 sm:$0xff]  }
 0x122   : > { %v6177_v42 = vpack.c.bf16 %v1491_v38, %v1491_v38  ;;  %v5239_v39 = vld [vmem:[%s7004_s2 + $0x484] ss:$8 sps:$4 sm:$0xff]  }
 0x123   : > { %v6179_v43 = vpack.c.bf16 %v1492_v41, %v1492_v41 }
 0x124   : > { %v6196_v51 = vshrl.u32 %v6177_v42, 16 }
 0x125   : > { %v1056_v46 = vpop.f32.mrb[28].mxu1  ;;  %1818 = vmatprep.mubr.bf16.mxu0 %v6179_v43  ;;  %v6189_v47 = vshrl.u32 %v6179_v43, 16 }
 0x126   : > { %v1067_v49 = vrot.slane %v1056_v46, 1  ;;  %v4925_v50 = vpop.f32.mrb[29].mxu1  ;;  %1819 = vmatmul.mubr.bf16.vlgmr.msra.gmra.mrb[28].mxu0 %v6177_v42  ;;  %v5237_v46 = vld [vmem:[%s7004_s2 + $0x480] ss:$8 sps:$4 sm:$0xff]  }
 0x127   : > { %1828 = vmatpush1.bf16.msra.mxu0 %v5186_v44  ;;  %v1059_v53 = vpop.f32.mrb[30].mxu1  ;;  %2220 = vmatprep.mubr.bf16.mxu1 %v6189_v47  ;;  %v5242_v44 = vld [vmem:[%s7004_s2 + $0x314] ss:$8 sps:$4 sm:$0xff]   ;;  %v5240_v50 = vld [vmem:[%s7004_s2 + $0x310] ss:$8 sps:$4 sm:$0xff]  }
 0x128   : > { %v1073_v55 = vadd.f32 %v1067_v49, %v933_v37  ;;  %v4926_v56 = vpop.f32.mrb[31].mxu1  ;;  %2221 = vmatmul.mubr.bf16.vlgmr.msra.gmra.mrb[44].mxu1 %v6196_v51  ;;  %1829 = vmatprep.subr.bf16.mxu0 %v5194_v45  ;;  %v5231_v37 = vld [vmem:[%s7004_s2 + $0x2f0] ss:$8 sps:$4 sm:$0xff]   ;;  %v2342_v45 = vrot.slane %v6179_v43, 1  ;;  %v2738_v49 = vrot.slane %v6189_v47, 1 }
 0x129   : > { %2230 = vmatpush1.bf16.msra.mxu1 %v5189_v48  ;;  %1859 = vmatprep.mubr.bf16.mxu0 %v5602_v2  ;;  %v5245_v48 = vld [vmem:[%s7004_s2 + $0x494] ss:$8 sps:$4 sm:$0xff]   ;;  %v5243_v53 = vld [vmem:[%s7004_s2 + $0x490] ss:$8 sps:$4 sm:$0xff]  }
 0x12a   : > { %2231 = vmatprep.subr.bf16.mxu1 %v5197_v52  ;;  %2261 = vmatprep.mubr.bf16.mxu1 %v5602_v2  ;;  %v5248_v52 = vld [vmem:[%s7004_s2 + $0x324] ss:$8 sps:$4 sm:$0xff]   ;;  %v5254_v56 = vld [vmem:[%s7004_s2 + $0x334] ss:$8 sps:$4 sm:$0xff]  }
 0x12b   : > { %1830 = vmatpush1.bf16.msra.mxu0 %v5192_v54  ;;  %v5251_v54 = vld [vmem:[%s7004_s2 + $0x4a4] ss:$8 sps:$4 sm:$0xff]  }
 0x12c   : > { %1831 = vmatprep.subr.bf16.mxu0 %v5200_v57  ;;  %v5249_v57 = vld [vmem:[%s7004_s2 + $0x4a0] ss:$8 sps:$4 sm:$0xff]  }
 0x12d   : > { %2232 = vmatpush1.bf16.msra.mxu1 %v5195_v58  ;;  %v1196_v62 = vpop.f32.mrb[32].mxu1  ;;  %v5257_v58 = vld [vmem:[%s7004_s2 + $0x4b4] ss:$8 sps:$4 sm:$0xff]  }
 0x12e   : > { %v1207_v0 = vrot.slane %v1196_v62, 1  ;;  %v4933_v1 = vpop.f32.mrb[33].mxu1  ;;  %2233 = vmatprep.subr.bf16.mxu1 %v5203_v59  ;;  %v5252_v59 = vld [vmem:[%s7004_s2 + $0x330] ss:$8 sps:$4 sm:$0xff]   ;;  %v5263_v62 = vld [vmem:[%s7004_s2 + $0x4c4] ss:$8 sps:$4 sm:$0xff]  }
 0x12f   : > { %1832 = vmatpush1.bf16.msra.mxu0 %v5198_v60  ;;  %v1199_v4 = vpop.f32.mrb[34].mxu1  ;;  %v5260_v60 = vld [vmem:[%s7004_s2 + $0x344] ss:$8 sps:$4 sm:$0xff]   ;;  %v5261_v1 = vld [vmem:[%s7004_s2 + $0x4c0] ss:$8 sps:$4 sm:$0xff]  }
 0x130   : > { %v1213_v6 = vadd.f32 %v1207_v0, %v1073_v55  ;;  %v4934_v7 = vpop.f32.mrb[35].mxu1  ;;  %1833 = vmatprep.subr.bf16.mxu0 %v5206_v61  ;;  %v5246_v55 = vld [vmem:[%s7004_s2 + $0x320] ss:$8 sps:$4 sm:$0xff]   ;;  %v5255_v61 = vld [vmem:[%s7004_s2 + $0x4b0] ss:$8 sps:$4 sm:$0xff]  }
 0x131   : > { %2234 = vmatpush1.bf16.msra.mxu1 %v5201_v63  ;;  %v5258_v63 = vld [vmem:[%s7004_s2 + $0x340] ss:$8 sps:$4 sm:$0xff]   ;;  %v5266_v0 = vld [vmem:[%s7004_s2 + $0x354] ss:$8 sps:$4 sm:$0xff]   ;;  %v5264_v4 = vld [vmem:[%s7004_s2 + $0x350] ss:$8 sps:$4 sm:$0xff]  }
 0x132   : > { %2235 = vmatprep.subr.bf16.mxu1 %v5209_v3  ;;  %v5269_v3 = vld [vmem:[%s7004_s2 + $0x4d4] ss:$8 sps:$4 sm:$0xff]   ;;  %v5275_v7 = vld [vmem:[%s7004_s2 + $0x4e4] ss:$8 sps:$4 sm:$0xff]  }
 0x133   : > { %1834 = vmatpush1.bf16.msra.mxu0 %v5204_v5  ;;  %v5272_v5 = vld [vmem:[%s7004_s2 + $0x364] ss:$8 sps:$4 sm:$0xff]  }
 0x134   : > { %1835 = vmatprep.subr.bf16.mxu0 %v5212_v8  ;;  %v5270_v8 = vld [vmem:[%s7004_s2 + $0x360] ss:$8 sps:$4 sm:$0xff]  }
 0x135   : > { %2236 = vmatpush1.bf16.msra.mxu1 %v5207_v9  ;;  %v1336_v16 = vpop.f32.mrb[36].mxu1  ;;  %v5278_v9 = vld [vmem:[%s7004_s2 + $0x374] ss:$8 sps:$4 sm:$0xff]  }
 0x136   : > { %v1347_v18 = vrot.slane %v1336_v16, 1  ;;  %v4941_v19 = vpop.f32.mrb[37].mxu1  ;;  %2237 = vmatprep.subr.bf16.mxu1 %v5215_v10  ;;  %v5273_v10 = vld [vmem:[%s7004_s2 + $0x4e0] ss:$8 sps:$4 sm:$0xff]   ;;  %v5284_v16 = vld [vmem:[%s7004_s2 + $0x384] ss:$8 sps:$4 sm:$0xff]  }
 0x137   : > { %1836 = vmatpush1.bf16.msra.mxu0 %v5210_v11  ;;  %v1339_v14 = vpop.f32.mrb[38].mxu1  ;;  %v5281_v11 = vld [vmem:[%s7004_s2 + $0x4f4] ss:$8 sps:$4 sm:$0xff]   ;;  %v5282_v19 = vld [vmem:[%s7004_s2 + $0x380] ss:$8 sps:$4 sm:$0xff]  }
 0x138   : > { %v1353_v22 = vadd.f32 %v1347_v18, %v1213_v6  ;;  %v4942_v23 = vpop.f32.mrb[39].mxu1  ;;  %1837 = vmatprep.subr.bf16.mxu0 %v5218_v12  ;;  %v5267_v6 = vld [vmem:[%s7004_s2 + $0x4d0] ss:$8 sps:$4 sm:$0xff]   ;;  %v5287_v18 = vld [vmem:[%s7004_s2 + $0x504] ss:$8 sps:$4 sm:$0xff]  }
 0x139   : > { %2238 = vmatpush1.bf16.msra.mxu1 %v5213_v17  ;;  %v5276_v12 = vld [vmem:[%s7004_s2 + $0x370] ss:$8 sps:$4 sm:$0xff]   ;;  %v5285_v14 = vld [vmem:[%s7004_s2 + $0x500] ss:$8 sps:$4 sm:$0xff]   ;;  %v5296_v23 = vld [vmem:[%s7004_s2 + $0x3a4] ss:$8 sps:$4 sm:$0xff]  }
 0x13a   : > { %2239 = vmatprep.subr.bf16.mxu1 %v5221_v20  ;;  %v5279_v17 = vld [vmem:[%s7004_s2 + $0x4f0] ss:$8 sps:$4 sm:$0xff]   ;;  %v5290_v20 = vld [vmem:[%s7004_s2 + $0x394] ss:$8 sps:$4 sm:$0xff]  }
 0x13b   : > { %1838 = vmatpush1.bf16.msra.mxu0 %v5216_v21  ;;  %v5293_v21 = vld [vmem:[%s7004_s2 + $0x514] ss:$8 sps:$4 sm:$0xff]  }
 0x13c   : > { %1839 = vmatprep.subr.bf16.mxu0 %v5224_v24  ;;  %v5291_v24 = vld [vmem:[%s7004_s2 + $0x510] ss:$8 sps:$4 sm:$0xff]  }
 0x13d   : > { %2240 = vmatpush1.bf16.msra.mxu1 %v5219_v15  ;;  %v1476_v27 = vpop.f32.mrb[40].mxu1  ;;  %v5299_v15 = vld [vmem:[%s7004_s2 + $0x524] ss:$8 sps:$4 sm:$0xff]  }
 0x13e   : > { %v1487_v29 = vrot.slane %v1476_v27, 2  ;;  %v4949_v30 = vpop.f32.mrb[41].mxu1  ;;  %2241 = vmatprep.subr.bf16.mxu1 %v5227_v25  ;;  %v5294_v25 = vld [vmem:[%s7004_s2 + $0x3a0] ss:$8 sps:$4 sm:$0xff]   ;;  %v5305_v27 = vld [vmem:[%s7004_s2 + $0x534] ss:$8 sps:$4 sm:$0xff]  }
 0x13f   : > { %1840 = vmatpush1.bf16.msra.mxu0 %v5222_v26  ;;  %v1479_v32 = vpop.f32.mrb[42].mxu1  ;;  %v5302_v26 = vld [vmem:[%s7004_s2 + $0x3b4] ss:$8 sps:$4 sm:$0xff]   ;;  %v5303_v30 = vld [vmem:[%s7004_s2 + $0x530] ss:$8 sps:$4 sm:$0xff]  }
 0x140   : > { %v1493_v34 = vadd.f32 %v1487_v29, %v1353_v22  ;;  %v4950_v35 = vpop.f32.mrb[43].mxu1  ;;  %1841 = vmatprep.subr.bf16.mxu0 %v5230_v13  ;;  %v5288_v22 = vld [vmem:[%s7004_s2 + $0x390] ss:$8 sps:$4 sm:$0xff]   ;;  %v5297_v13 = vld [vmem:[%s7004_s2 + $0x520] ss:$8 sps:$4 sm:$0xff]  }
 0x141   : > { %2242 = vmatpush1.bf16.msra.mxu1 %v5225_v28  ;;  %v5300_v28 = vld [vmem:[%s7004_s2 + $0x3b0] ss:$8 sps:$4 sm:$0xff]   ;;  %v5308_v29 = vld [vmem:[%s7004_s2 + $0x3c4] ss:$8 sps:$4 sm:$0xff]   ;;  %v5306_v32 = vld [vmem:[%s7004_s2 + $0x3c0] ss:$8 sps:$4 sm:$0xff]  }
 0x142   : > { %v6286_v38 = vpack.c.bf16 %v1493_v34, %v1493_v34  ;;  %2243 = vmatprep.subr.bf16.mxu1 %v5233_v31  ;;  %v5311_v31 = vld [vmem:[%s7004_s2 + $0x544] ss:$8 sps:$4 sm:$0xff]   ;;  %v5309_v34 = vld [vmem:[%s7004_s2 + $0x540] ss:$8 sps:$4 sm:$0xff]   ;;  %v5317_v35 = vld [vmem:[%s7004_s2 + $0x554] ss:$8 sps:$4 sm:$0xff]  }
 0x143   : > { %1842 = vmatpush1.bf16.msra.mxu0 %v5228_v33  ;;  %v5314_v33 = vld [vmem:[%s7004_s2 + $0x3d4] ss:$8 sps:$4 sm:$0xff]  }
 0x144   : > { %2587 = vmatprep.subr.bf16.mxu0 %v5236_v36  ;;  %v6295_v41 = vshrl.u32 %v6286_v38, 16  ;;  %v5312_v36 = vld [vmem:[%s7004_s2 + $0x3d0] ss:$8 sps:$4 sm:$0xff]  }
 0x145   : > { %2244 = vmatpush1.bf16.msra.mxu1 %v5231_v37  ;;  %v5320_v37 = vld [vmem:[%s7004_s2 + $0x3e4] ss:$8 sps:$4 sm:$0xff]  }
 0x146   : > { %1860 = vmatmul.mubr.bf16.vlgmr.msra.gmra.mrb[28].mxu0 %v6286_v38  ;;  %2983 = vmatprep.subr.bf16.mxu1 %v5239_v39  ;;  %v5315_v39 = vld [vmem:[%s7004_s2 + $0x550] ss:$8 sps:$4 sm:$0xff]  }
 0x147   : > { %2588 = vmatpush1.bf16.msra.mxu0 %v5234_v40  ;;  %2619 = vmatprep.mubr.bf16.mxu0 %v2342_v45  ;;  %v5323_v40 = vld [vmem:[%s7004_s2 + $0x564] ss:$8 sps:$4 sm:$0xff]   ;;  %v5326_v45 = vld [vmem:[%s7004_s2 + $0x3f4] ss:$8 sps:$4 sm:$0xff]  }
 0x148   : > { %2262 = vmatmul.mubr.bf16.vlgmr.msra.gmra.mrb[44].mxu1 %v6295_v41  ;;  %2589 = vmatprep.subr.bf16.mxu0 %v5242_v44  ;;  %v5318_v44 = vld [vmem:[%s7004_s2 + $0x3e0] ss:$8 sps:$4 sm:$0xff]  }
 0x149   : > { %2984 = vmatpush1.bf16.msra.mxu1 %v5237_v46  ;;  %3015 = vmatprep.mubr.bf16.mxu1 %v2738_v49  ;;  %v5321_v46 = vld [vmem:[%s7004_s2 + $0x560] ss:$8 sps:$4 sm:$0xff]   ;;  %v5324_v49 = vld [vmem:[%s7004_s2 + $0x3f0] ss:$8 sps:$4 sm:$0xff]  }
 0x14a   : > { %2985 = vmatprep.subr.bf16.mxu1 %v5245_v48  ;;  %v5329_v48 = vld [vmem:[%s7004_s2 + $0x574] ss:$8 sps:$4 sm:$0xff]  }
 0x14b   : > { %2590 = vmatpush1.bf16.msra.mxu0 %v5240_v50  ;;  %v5332_v50 = vld [vmem:[%s7004_s2 + $0x404] ss:$8 sps:$4 sm:$0xff]  }
 0x14c   : > { %2591 = vmatprep.subr.bf16.mxu0 %v5248_v52  ;;  %v5327_v52 = vld [vmem:[%s7004_s2 + $0x570] ss:$8 sps:$4 sm:$0xff]  }
 0x14d   : > { %2986 = vmatpush1.bf16.msra.mxu1 %v5243_v53  ;;  %v5335_v53 = vld [vmem:[%s7004_s2 + $0x584] ss:$8 sps:$4 sm:$0xff]  }
 0x14e   : > { %2987 = vmatprep.subr.bf16.mxu1 %v5251_v54  ;;  %v5330_v54 = vld [vmem:[%s7004_s2 + $0x400] ss:$8 sps:$4 sm:$0xff]  }
 0x14f   : > { %2592 = vmatpush1.bf16.msra.mxu0 %v5246_v55  ;;  %v2341_v55 = vrot.slane %v6177_v42, 1 }
 0x150   : > { %2593 = vmatprep.subr.bf16.mxu0 %v5254_v56  ;;  %v5338_v56 = vld [vmem:[%s7004_s2 + $0x414] ss:$8 sps:$4 sm:$0xff]  }
 0x151   : > { %2988 = vmatpush1.bf16.msra.mxu1 %v5249_v57  ;;  %v5333_v57 = vld [vmem:[%s7004_s2 + $0x580] ss:$8 sps:$4 sm:$0xff]  }
 0x152   : > { %2989 = vmatprep.subr.bf16.mxu1 %v5257_v58  ;;  %v2737_v58 = vrot.slane %v6196_v51, 1 }
 0x153   : > { %2594 = vmatpush1.bf16.msra.mxu0 %v5252_v59  ;;  %v5341_v59 = vld [vmem:[%s7004_s2 + $0x594] ss:$8 sps:$4 sm:$0xff]  }
 0x154   : > { %2595 = vmatprep.subr.bf16.mxu0 %v5260_v60  ;;  %v5336_v60 = vld [vmem:[%s7004_s2 + $0x410] ss:$8 sps:$4 sm:$0xff]  }
 0x155   : > { %2990 = vmatpush1.bf16.msra.mxu1 %v5255_v61  ;;  %v5344_v61 = vld [vmem:[%s7004_s2 + $0x424] ss:$8 sps:$4 sm:$0xff]  }
 0x156   : > { %2991 = vmatprep.subr.bf16.mxu1 %v5263_v62  ;;  %v5339_v62 = vld [vmem:[%s7004_s2 + $0x590] ss:$8 sps:$4 sm:$0xff]  }
 0x157   : > { %2596 = vmatpush1.bf16.msra.mxu0 %v5258_v63  ;;  %v5347_v63 = vld [vmem:[%s7004_s2 + $0x5a4] ss:$8 sps:$4 sm:$0xff]  }
 0x158   : > { %2597 = vmatprep.subr.bf16.mxu0 %v5266_v0  ;;  %v5342_v0 = vld [vmem:[%s7004_s2 + $0x420] ss:$8 sps:$4 sm:$0xff]  }
 0x159   : > { %2992 = vmatpush1.bf16.msra.mxu1 %v5261_v1  ;;  %v5350_v1 = vld [vmem:[%s7004_s2 + $0x434] ss:$8 sps:$4 sm:$0xff]  }
 0x15a   : > { %2993 = vmatprep.subr.bf16.mxu1 %v5269_v3  ;;  %v5345_v3 = vld [vmem:[%s7004_s2 + $0x5a0] ss:$8 sps:$4 sm:$0xff]  }
 0x15b   : > { %2598 = vmatpush1.bf16.msra.mxu0 %v5264_v4  ;;  %v5353_v4 = vld [vmem:[%s7004_s2 + $0x5b4] ss:$8 sps:$4 sm:$0xff]  }
 0x15c   : > { %2599 = vmatprep.subr.bf16.mxu0 %v5272_v5  ;;  %v5348_v5 = vld [vmem:[%s7004_s2 + $0x430] ss:$8 sps:$4 sm:$0xff]  }
 0x15d   : > { %2994 = vmatpush1.bf16.msra.mxu1 %v5267_v6  ;;  %v5356_v6 = vld [vmem:[%s7004_s2 + $0x444] ss:$8 sps:$4 sm:$0xff]  }
 0x15e   : > { %2995 = vmatprep.subr.bf16.mxu1 %v5275_v7  ;;  %v5351_v7 = vld [vmem:[%s7004_s2 + $0x5b0] ss:$8 sps:$4 sm:$0xff]  }
 0x15f   : > { %2600 = vmatpush1.bf16.msra.mxu0 %v5270_v8  ;;  %v5359_v8 = vld [vmem:[%s7004_s2 + $0x5c4] ss:$8 sps:$4 sm:$0xff]  }
 0x160   : > { %2601 = vmatprep.subr.bf16.mxu0 %v5278_v9  ;;  %v5354_v9 = vld [vmem:[%s7004_s2 + $0x440] ss:$8 sps:$4 sm:$0xff]  }
 0x161   : > { %2996 = vmatpush1.bf16.msra.mxu1 %v5273_v10  ;;  %v5362_v10 = vld [vmem:[%s7004_s2 + $0x454] ss:$8 sps:$4 sm:$0xff]  }
 0x162   : > { %2997 = vmatprep.subr.bf16.mxu1 %v5281_v11  ;;  %v5357_v11 = vld [vmem:[%s7004_s2 + $0x5c0] ss:$8 sps:$4 sm:$0xff]  }
 0x163   : > { %2602 = vmatpush1.bf16.msra.mxu0 %v5276_v12  ;;  %v5365_v12 = vld [vmem:[%s7004_s2 + $0x5d4] ss:$8 sps:$4 sm:$0xff]  }
 0x164   : > { %2603 = vmatprep.subr.bf16.mxu0 %v5284_v16  ;;  %v5360_v16 = vld [vmem:[%s7004_s2 + $0x450] ss:$8 sps:$4 sm:$0xff]  }
 0x165   : > { %2998 = vmatpush1.bf16.msra.mxu1 %v5279_v17  ;;  %v5368_v17 = vld [vmem:[%s7004_s2 + $0x464] ss:$8 sps:$4 sm:$0xff]  }
 0x166   : > { %2999 = vmatprep.subr.bf16.mxu1 %v5287_v18  ;;  %v5363_v18 = vld [vmem:[%s7004_s2 + $0x5d0] ss:$8 sps:$4 sm:$0xff]  }
 0x167   : > { %2604 = vmatpush1.bf16.msra.mxu0 %v5282_v19  ;;  %v5371_v19 = vld [vmem:[%s7004_s2 + $0x5e4] ss:$8 sps:$4 sm:$0xff]  }
 0x168   : > { %2605 = vmatprep.subr.bf16.mxu0 %v5290_v20  ;;  %v5366_v20 = vld [vmem:[%s7004_s2 + $0x460] ss:$8 sps:$4 sm:$0xff]  }
 0x169   : > { %3000 = vmatpush1.bf16.msra.mxu1 %v5285_v14  ;;  %v5374_v14 = vld [vmem:[%s7004_s2 + $0x474] ss:$8 sps:$4 sm:$0xff]  }
 0x16a   : > { %3001 = vmatprep.subr.bf16.mxu1 %v5293_v21  ;;  %v5369_v21 = vld [vmem:[%s7004_s2 + $0x5e0] ss:$8 sps:$4 sm:$0xff]  }
 0x16b   : > { %2606 = vmatpush1.bf16.msra.mxu0 %v5288_v22  ;;  %v5377_v22 = vld [vmem:[%s7004_s2 + $0x5f4] ss:$8 sps:$4 sm:$0xff]  }
 0x16c   : > { %2607 = vmatprep.subr.bf16.mxu0 %v5296_v23  ;;  %v5372_v23 = vld [vmem:[%s7004_s2 + $0x470] ss:$8 sps:$4 sm:$0xff]  }
 0x16d   : > { %3002 = vmatpush1.bf16.msra.mxu1 %v5291_v24  ;;  %v5380_v24 = vld [vmem:[%s7004_s2 + $0x604] ss:$8 sps:$4 sm:$0xff]  }
 0x16e   : > { %3003 = vmatprep.subr.bf16.mxu1 %v5299_v15  ;;  %v5375_v15 = vld [vmem:[%s7004_s2 + $0x5f0] ss:$8 sps:$4 sm:$0xff]  }
 0x16f   : > { %2608 = vmatpush1.bf16.msra.mxu0 %v5294_v25  ;;  %v5383_v25 = vld [vmem:[%s7004_s2 + $0x784] ss:$8 sps:$4 sm:$0xff]  }
 0x170   : > { %2609 = vmatprep.subr.bf16.mxu0 %v5302_v26  ;;  %v5378_v26 = vld [vmem:[%s7004_s2 + $0x600] ss:$8 sps:$4 sm:$0xff]  }
 0x171   : > { %3004 = vmatpush1.bf16.msra.mxu1 %v5297_v13  ;;  %v2343_v13 = vrot.slane %v6286_v38, 1 }
 0x172   : > { %3005 = vmatprep.subr.bf16.mxu1 %v5305_v27  ;;  %v5386_v27 = vld [vmem:[%s7004_s2 + $0x614] ss:$8 sps:$4 sm:$0xff]  }
 0x173   : > { %2610 = vmatpush1.bf16.msra.mxu0 %v5300_v28  ;;  %v3134_v28 = vrot.slane %v6179_v43, 2  ;;  %v5384_v43 = vld [vmem:[%s7004_s2 + $0x610] ss:$8 sps:$4 sm:$0xff]  }
 0x174   : > { %2611 = vmatprep.subr.bf16.mxu0 %v5308_v29  ;;  %v5381_v29 = vld [vmem:[%s7004_s2 + $0x780] ss:$8 sps:$4 sm:$0xff]  }
 0x175   : > { %3006 = vmatpush1.bf16.msra.mxu1 %v5303_v30  ;;  %v2739_v30 = vrot.slane %v6295_v41, 1 }
 0x176   : > { %3007 = vmatprep.subr.bf16.mxu1 %v5311_v31  ;;  %v5389_v31 = vld [vmem:[%s7004_s2 + $0x794] ss:$8 sps:$4 sm:$0xff]  }
 0x177   : > { %2612 = vmatpush1.bf16.msra.mxu0 %v5306_v32  ;;  %v3530_v32 = vrot.slane %v6189_v47, 2  ;;  %v5395_v47 = vld [vmem:[%s7004_s2 + $0x7a4] ss:$8 sps:$4 sm:$0xff]  }
 0x178   : > { %2613 = vmatprep.subr.bf16.mxu0 %v5314_v33  ;;  %v5392_v33 = vld [vmem:[%s7004_s2 + $0x624] ss:$8 sps:$4 sm:$0xff]  }
 0x179   : > { %3008 = vmatpush1.bf16.msra.mxu1 %v5309_v34  ;;  %v5387_v34 = vld [vmem:[%s7004_s2 + $0x790] ss:$8 sps:$4 sm:$0xff]  }
 0x17a   : > { %3009 = vmatprep.subr.bf16.mxu1 %v5317_v35  ;;  %v5390_v35 = vld [vmem:[%s7004_s2 + $0x620] ss:$8 sps:$4 sm:$0xff]  }
 0x17b   : > { %2614 = vmatpush1.bf16.msra.mxu0 %v5312_v36  ;;  %v5398_v36 = vld [vmem:[%s7004_s2 + $0x634] ss:$8 sps:$4 sm:$0xff]  }
 0x17c   : > { %2615 = vmatprep.subr.bf16.mxu0 %v5320_v37  ;;  %v5393_v37 = vld [vmem:[%s7004_s2 + $0x7a0] ss:$8 sps:$4 sm:$0xff]  }
 0x17d   : > { %3010 = vmatpush1.bf16.msra.mxu1 %v5315_v39  ;;  %v5401_v39 = vld [vmem:[%s7004_s2 + $0x7b4] ss:$8 sps:$4 sm:$0xff]  }
 0x17e   : > { %3011 = vmatprep.subr.bf16.mxu1 %v5323_v40  ;;  %v5396_v40 = vld [vmem:[%s7004_s2 + $0x630] ss:$8 sps:$4 sm:$0xff]  }
 0x17f   : > { %2616 = vmatpush1.bf16.msra.mxu0 %v5318_v44  ;;  %v5404_v44 = vld [vmem:[%s7004_s2 + $0x644] ss:$8 sps:$4 sm:$0xff]  }
 0x180   : > { %2617 = vmatprep.subr.bf16.mxu0 %v5326_v45  ;;  %v5399_v45 = vld [vmem:[%s7004_s2 + $0x7b0] ss:$8 sps:$4 sm:$0xff]  }
 0x181   : > { %3012 = vmatpush1.bf16.msra.mxu1 %v5321_v46  ;;  %v5407_v46 = vld [vmem:[%s7004_s2 + $0x7c4] ss:$8 sps:$4 sm:$0xff]  }
 0x182   : > { %3013 = vmatprep.subr.bf16.mxu1 %v5329_v48  ;;  %v5402_v48 = vld [vmem:[%s7004_s2 + $0x640] ss:$8 sps:$4 sm:$0xff]  }
 0x183   : > { %2618 = vmatpush1.bf16.msra.mxu0 %v5324_v49  ;;  %v5410_v49 = vld [vmem:[%s7004_s2 + $0x654] ss:$8 sps:$4 sm:$0xff]  }
 0x184   : > { %2628 = vmatprep.subr.bf16.mxu0 %v5332_v50  ;;  %v5405_v50 = vld [vmem:[%s7004_s2 + $0x7c0] ss:$8 sps:$4 sm:$0xff]  }
 0x185   : > { %3014 = vmatpush1.bf16.msra.mxu1 %v5327_v52  ;;  %v5413_v52 = vld [vmem:[%s7004_s2 + $0x7d4] ss:$8 sps:$4 sm:$0xff]  }
 0x186   : > { %2620 = vmatmul.mubr.bf16.vlgmr.msra.gmra.mrb[32].mxu0 %v2341_v55  ;;  %3024 = vmatprep.subr.bf16.mxu1 %v5335_v53  ;;  %v5408_v53 = vld [vmem:[%s7004_s2 + $0x650] ss:$8 sps:$4 sm:$0xff]  }
 0x187   : > { %2629 = vmatpush1.bf16.msra.mxu0 %v5330_v54  ;;  %2660 = vmatprep.mubr.bf16.mxu0 %v5602_v2  ;;  %v5416_v54 = vld [vmem:[%s7004_s2 + $0x664] ss:$8 sps:$4 sm:$0xff]   ;;  %v5411_v55 = vld [vmem:[%s7004_s2 + $0x7d0] ss:$8 sps:$4 sm:$0xff]  }
 0x188   : > { %3016 = vmatmul.mubr.bf16.vlgmr.msra.gmra.mrb[48].mxu1 %v2737_v58  ;;  %2630 = vmatprep.subr.bf16.mxu0 %v5338_v56  ;;  %v5419_v56 = vld [vmem:[%s7004_s2 + $0x7e4] ss:$8 sps:$4 sm:$0xff]   ;;  %v5422_v58 = vld [vmem:[%s7004_s2 + $0x674] ss:$8 sps:$4 sm:$0xff]  }
 0x189   : > { %3025 = vmatpush1.bf16.msra.mxu1 %v5333_v57  ;;  %3056 = vmatprep.mubr.bf16.mxu1 %v5602_v2  ;;  %v5414_v57 = vld [vmem:[%s7004_s2 + $0x660] ss:$8 sps:$4 sm:$0xff]  }
 0x18a   : > { %3026 = vmatprep.subr.bf16.mxu1 %v5341_v59  ;;  %v5417_v59 = vld [vmem:[%s7004_s2 + $0x7e0] ss:$8 sps:$4 sm:$0xff]  }
 0x18b   : > { %2631 = vmatpush1.bf16.msra.mxu0 %v5336_v60  ;;  %v5425_v60 = vld [vmem:[%s7004_s2 + $0x7f4] ss:$8 sps:$4 sm:$0xff]  }
 0x18c   : > { %2632 = vmatprep.subr.bf16.mxu0 %v5344_v61  ;;  %v5420_v61 = vld [vmem:[%s7004_s2 + $0x670] ss:$8 sps:$4 sm:$0xff]  }
 0x18d   : > { %3027 = vmatpush1.bf16.msra.mxu1 %v5339_v62  ;;  %v5428_v62 = vld [vmem:[%s7004_s2 + $0x684] ss:$8 sps:$4 sm:$0xff]  }
 0x18e   : > { %3028 = vmatprep.subr.bf16.mxu1 %v5347_v63  ;;  %v5423_v63 = vld [vmem:[%s7004_s2 + $0x7f0] ss:$8 sps:$4 sm:$0xff]  }
 0x18f   : > { %2633 = vmatpush1.bf16.msra.mxu0 %v5342_v0  ;;  %v5431_v0 = vld [vmem:[%s7004_s2 + $0x804] ss:$8 sps:$4 sm:$0xff]  }
 0x190   : > { %2634 = vmatprep.subr.bf16.mxu0 %v5350_v1  ;;  %v5426_v1 = vld [vmem:[%s7004_s2 + $0x680] ss:$8 sps:$4 sm:$0xff]  }
 0x191   : > { %3029 = vmatpush1.bf16.msra.mxu1 %v5345_v3  ;;  %v5434_v3 = vld [vmem:[%s7004_s2 + $0x694] ss:$8 sps:$4 sm:$0xff]  }
 0x192   : > { %3030 = vmatprep.subr.bf16.mxu1 %v5353_v4  ;;  %v5429_v4 = vld [vmem:[%s7004_s2 + $0x800] ss:$8 sps:$4 sm:$0xff]  }
 0x193   : > { %2635 = vmatpush1.bf16.msra.mxu0 %v5348_v5  ;;  %v5437_v5 = vld [vmem:[%s7004_s2 + $0x814] ss:$8 sps:$4 sm:$0xff]  }
 0x194   : > { %2636 = vmatprep.subr.bf16.mxu0 %v5356_v6  ;;  %v5432_v6 = vld [vmem:[%s7004_s2 + $0x690] ss:$8 sps:$4 sm:$0xff]  }
 0x195   : > { %3031 = vmatpush1.bf16.msra.mxu1 %v5351_v7  ;;  %v5440_v7 = vld [vmem:[%s7004_s2 + $0x6a4] ss:$8 sps:$4 sm:$0xff]  }
 0x196   : > { %3032 = vmatprep.subr.bf16.mxu1 %v5359_v8  ;;  %v5435_v8 = vld [vmem:[%s7004_s2 + $0x810] ss:$8 sps:$4 sm:$0xff]  }
 0x197   : > { %2637 = vmatpush1.bf16.msra.mxu0 %v5354_v9  ;;  %v5443_v9 = vld [vmem:[%s7004_s2 + $0x824] ss:$8 sps:$4 sm:$0xff]  }
 0x198   : > { %2638 = vmatprep.subr.bf16.mxu0 %v5362_v10  ;;  %v5438_v10 = vld [vmem:[%s7004_s2 + $0x6a0] ss:$8 sps:$4 sm:$0xff]  }
 0x199   : > { %3033 = vmatpush1.bf16.msra.mxu1 %v5357_v11  ;;  %v5446_v11 = vld [vmem:[%s7004_s2 + $0x6b4] ss:$8 sps:$4 sm:$0xff]  }
 0x19a   : > { %3034 = vmatprep.subr.bf16.mxu1 %v5365_v12  ;;  %v5441_v12 = vld [vmem:[%s7004_s2 + $0x820] ss:$8 sps:$4 sm:$0xff]  }
 0x19b   : > { %2639 = vmatpush1.bf16.msra.mxu0 %v5360_v16  ;;  %v5449_v16 = vld [vmem:[%s7004_s2 + $0x834] ss:$8 sps:$4 sm:$0xff]  }
 0x19c   : > { %2640 = vmatprep.subr.bf16.mxu0 %v5368_v17  ;;  %v5444_v17 = vld [vmem:[%s7004_s2 + $0x6b0] ss:$8 sps:$4 sm:$0xff]  }
 0x19d   : > { %3035 = vmatpush1.bf16.msra.mxu1 %v5363_v18  ;;  %v5452_v18 = vld [vmem:[%s7004_s2 + $0x6c4] ss:$8 sps:$4 sm:$0xff]  }
 0x19e   : > { %3036 = vmatprep.subr.bf16.mxu1 %v5371_v19  ;;  %v5447_v19 = vld [vmem:[%s7004_s2 + $0x830] ss:$8 sps:$4 sm:$0xff]  }
 0x19f   : > { %2641 = vmatpush1.bf16.msra.mxu0 %v5366_v20  ;;  %v5455_v20 = vld [vmem:[%s7004_s2 + $0x844] ss:$8 sps:$4 sm:$0xff]  }
 0x1a0   : > { %2642 = vmatprep.subr.bf16.mxu0 %v5374_v14  ;;  %v5450_v14 = vld [vmem:[%s7004_s2 + $0x6c0] ss:$8 sps:$4 sm:$0xff]  }
 0x1a1   : > { %3037 = vmatpush1.bf16.msra.mxu1 %v5369_v21  ;;  %v5458_v21 = vld [vmem:[%s7004_s2 + $0x6d4] ss:$8 sps:$4 sm:$0xff]  }
 0x1a2   : > { %3038 = vmatprep.subr.bf16.mxu1 %v5377_v22  ;;  %v5453_v22 = vld [vmem:[%s7004_s2 + $0x840] ss:$8 sps:$4 sm:$0xff]  }
 0x1a3   : > { %2643 = vmatpush1.bf16.msra.mxu0 %v5372_v23  ;;  %v5461_v23 = vld [vmem:[%s7004_s2 + $0x854] ss:$8 sps:$4 sm:$0xff]  }
 0x1a4   : > { %3379 = vmatprep.subr.bf16.mxu0 %v5380_v24  ;;  %v5456_v24 = vld [vmem:[%s7004_s2 + $0x6d0] ss:$8 sps:$4 sm:$0xff]  }
 0x1a5   : > { %3039 = vmatpush1.bf16.msra.mxu1 %v5375_v15  ;;  %v5464_v15 = vld [vmem:[%s7004_s2 + $0x6e4] ss:$8 sps:$4 sm:$0xff]  }
 0x1a6   : > { %2661 = vmatmul.mubr.bf16.vlgmr.msra.gmra.mrb[32].mxu0 %v2343_v13  ;;  %3775 = vmatprep.subr.bf16.mxu1 %v5383_v25  ;;  %v5459_v25 = vld [vmem:[%s7004_s2 + $0x850] ss:$8 sps:$4 sm:$0xff]   ;;  %v5462_v13 = vld [vmem:[%s7004_s2 + $0x6e0] ss:$8 sps:$4 sm:$0xff]  }
 0x1a7   : > { %3380 = vmatpush1.bf16.msra.mxu0 %v5378_v26  ;;  %3411 = vmatprep.mubr.bf16.mxu0 %v3134_v28  ;;  %v5467_v26 = vld [vmem:[%s7004_s2 + $0x864] ss:$8 sps:$4 sm:$0xff]   ;;  %v5465_v28 = vld [vmem:[%s7004_s2 + $0x860] ss:$8 sps:$4 sm:$0xff]  }
 0x1a8   : > { %3057 = vmatmul.mubr.bf16.vlgmr.msra.gmra.mrb[48].mxu1 %v2739_v30  ;;  %3381 = vmatprep.subr.bf16.mxu0 %v5386_v27  ;;  %v5470_v27 = vld [vmem:[%s7004_s2 + $0x6f4] ss:$8 sps:$4 sm:$0xff]   ;;  %v5468_v30 = vld [vmem:[%s7004_s2 + $0x6f0] ss:$8 sps:$4 sm:$0xff]  }
 0x1a9   : > { %3776 = vmatpush1.bf16.msra.mxu1 %v5381_v29  ;;  %3807 = vmatprep.mubr.bf16.mxu1 %v3530_v32  ;;  %v5473_v29 = vld [vmem:[%s7004_s2 + $0x874] ss:$8 sps:$4 sm:$0xff]   ;;  %v5471_v32 = vld [vmem:[%s7004_s2 + $0x870] ss:$8 sps:$4 sm:$0xff]  }
 0x1aa   : > { %3777 = vmatprep.subr.bf16.mxu1 %v5389_v31  ;;  %v5476_v31 = vld [vmem:[%s7004_s2 + $0x704] ss:$8 sps:$4 sm:$0xff]  }
 0x1ab   : > { %3382 = vmatpush1.bf16.msra.mxu0 %v5384_v43  ;;  %v5479_v43 = vld [vmem:[%s7004_s2 + $0x884] ss:$8 sps:$4 sm:$0xff]  }
 0x1ac   : > { %3383 = vmatprep.subr.bf16.mxu0 %v5392_v33  ;;  %v5474_v33 = vld [vmem:[%s7004_s2 + $0x700] ss:$8 sps:$4 sm:$0xff]  }
 0x1ad   : > { %3778 = vmatpush1.bf16.msra.mxu1 %v5387_v34  ;;  %v3133_v34 = vrot.slane %v6177_v42, 2  ;;  %v5480_v42 = vld [vmem:[%s7004_s2 + $0x710] ss:$8 sps:$4 sm:$0xff]  }
 0x1ae   : > { %3779 = vmatprep.subr.bf16.mxu1 %v5395_v47  ;;  %v5482_v47 = vld [vmem:[%s7004_s2 + $0x714] ss:$8 sps:$4 sm:$0xff]  }
 0x1af   : > { %3384 = vmatpush1.bf16.msra.mxu0 %v5390_v35  ;;  %v5477_v35 = vld [vmem:[%s7004_s2 + $0x880] ss:$8 sps:$4 sm:$0xff]  }
 0x1b0   : > { %3385 = vmatprep.subr.bf16.mxu0 %v5398_v36  ;;  %v3529_v36 = vrot.slane %v6196_v51, 2  ;;  %v5483_v51 = vld [vmem:[%s7004_s2 + $0x890] ss:$8 sps:$4 sm:$0xff]  }
 0x1b1   : > { %3780 = vmatpush1.bf16.msra.mxu1 %v5393_v37  ;;  %v5485_v37 = vld [vmem:[%s7004_s2 + $0x894] ss:$8 sps:$4 sm:$0xff]  }
 0x1b2   : > { %3781 = vmatprep.subr.bf16.mxu1 %v5401_v39  ;;  %v5488_v39 = vld [vmem:[%s7004_s2 + $0x724] ss:$8 sps:$4 sm:$0xff]  }
 0x1b3   : > { %3386 = vmatpush1.bf16.msra.mxu0 %v5396_v40  ;;  %v5491_v40 = vld [vmem:[%s7004_s2 + $0x8a4] ss:$8 sps:$4 sm:$0xff]  }
 0x1b4   : > { %3387 = vmatprep.subr.bf16.mxu0 %v5404_v44  ;;  %v5486_v44 = vld [vmem:[%s7004_s2 + $0x720] ss:$8 sps:$4 sm:$0xff]  }
 0x1b5   : > { %3782 = vmatpush1.bf16.msra.mxu1 %v5399_v45  ;;  %v5494_v45 = vld [vmem:[%s7004_s2 + $0x734] ss:$8 sps:$4 sm:$0xff]  }
 0x1b6   : > { %3783 = vmatprep.subr.bf16.mxu1 %v5407_v46  ;;  %v5497_v46 = vld [vmem:[%s7004_s2 + $0x8b4] ss:$8 sps:$4 sm:$0xff]  }
 0x1b7   : > { %3388 = vmatpush1.bf16.msra.mxu0 %v5402_v48  ;;  %v5492_v48 = vld [vmem:[%s7004_s2 + $0x730] ss:$8 sps:$4 sm:$0xff]  }
 0x1b8   : > { %3389 = vmatprep.subr.bf16.mxu0 %v5410_v49  ;;  %v5500_v49 = vld [vmem:[%s7004_s2 + $0x744] ss:$8 sps:$4 sm:$0xff]  }
 0x1b9   : > { %3784 = vmatpush1.bf16.msra.mxu1 %v5405_v50  ;;  %v5495_v50 = vld [vmem:[%s7004_s2 + $0x8b0] ss:$8 sps:$4 sm:$0xff]  }
 0x1ba   : > { %3785 = vmatprep.subr.bf16.mxu1 %v5413_v52  ;;  %v5503_v52 = vld [vmem:[%s7004_s2 + $0x8c4] ss:$8 sps:$4 sm:$0xff]  }
 0x1bb   : > { %3390 = vmatpush1.bf16.msra.mxu0 %v5408_v53  ;;  %v5498_v53 = vld [vmem:[%s7004_s2 + $0x740] ss:$8 sps:$4 sm:$0xff]  }
 0x1bc   : > { %3391 = vmatprep.subr.bf16.mxu0 %v5416_v54  ;;  %v5506_v54 = vld [vmem:[%s7004_s2 + $0x754] ss:$8 sps:$4 sm:$0xff]  }
 0x1bd   : > { %3786 = vmatpush1.bf16.msra.mxu1 %v5411_v55  ;;  %v5501_v55 = vld [vmem:[%s7004_s2 + $0x8c0] ss:$8 sps:$4 sm:$0xff]  }
 0x1be   : > { %3787 = vmatprep.subr.bf16.mxu1 %v5419_v56  ;;  %v5509_v56 = vld [vmem:[%s7004_s2 + $0x8d4] ss:$8 sps:$4 sm:$0xff]  }
 0x1bf   : > { %3392 = vmatpush1.bf16.msra.mxu0 %v5414_v57  ;;  %v5504_v57 = vld [vmem:[%s7004_s2 + $0x750] ss:$8 sps:$4 sm:$0xff]  }
 0x1c0   : > { %3393 = vmatprep.subr.bf16.mxu0 %v5422_v58  ;;  %v5512_v58 = vld [vmem:[%s7004_s2 + $0x764] ss:$8 sps:$4 sm:$0xff]  }
 0x1c1   : > { %3788 = vmatpush1.bf16.msra.mxu1 %v5417_v59  ;;  %v5507_v59 = vld [vmem:[%s7004_s2 + $0x8d0] ss:$8 sps:$4 sm:$0xff]  }
 0x1c2   : > { %3789 = vmatprep.subr.bf16.mxu1 %v5425_v60  ;;  %v5515_v60 = vld [vmem:[%s7004_s2 + $0x8e4] ss:$8 sps:$4 sm:$0xff]  }
 0x1c3   : > { %3394 = vmatpush1.bf16.msra.mxu0 %v5420_v61  ;;  %v5510_v61 = vld [vmem:[%s7004_s2 + $0x760] ss:$8 sps:$4 sm:$0xff]  }
 0x1c4   : > { %3395 = vmatprep.subr.bf16.mxu0 %v5428_v62  ;;  %v5518_v62 = vld [vmem:[%s7004_s2 + $0x774] ss:$8 sps:$4 sm:$0xff]  }
 0x1c5   : > { %3790 = vmatpush1.bf16.msra.mxu1 %v5423_v63  ;;  %v5513_v63 = vld [vmem:[%s7004_s2 + $0x8e0] ss:$8 sps:$4 sm:$0xff]  }
 0x1c6   : > { %3791 = vmatprep.subr.bf16.mxu1 %v5431_v0  ;;  %v5521_v0 = vld [vmem:[%s7004_s2 + $0x8f4] ss:$8 sps:$4 sm:$0xff]  }
 0x1c7   : > { %3396 = vmatpush1.bf16.msra.mxu0 %v5426_v1  ;;  %v5516_v1 = vld [vmem:[%s7004_s2 + $0x770] ss:$8 sps:$4 sm:$0xff]  }
 0x1c8   : > { %3397 = vmatprep.subr.bf16.mxu0 %v5434_v3  ;;  %v5519_v3 = vld [vmem:[%s7004_s2 + $0x8f0] ss:$8 sps:$4 sm:$0xff]  }
 0x1c9   : > { %3792 = vmatpush1.bf16.msra.mxu1 %v5429_v4  ;;  %v5522_v4 = vld [vmem:[%s7006_s4 + $0x40] sm:$0xff]  }
 0x1ca   : > { %3793 = vmatprep.subr.bf16.mxu1 %v5437_v5  ;;  %v5523_v5 = vld [vmem:[%s7006_s4] sm:$0xff]  }
 0x1cb   : > { %3398 = vmatpush1.bf16.msra.mxu0 %v5432_v6  ;;  %v3135_v6 = vrot.slane %v6286_v38, 2  ;;  %v5526_v38 = vld [vmem:[%s7006_s4 + $0x50] sm:$0xff]  }
 0x1cc   : > { %3399 = vmatprep.subr.bf16.mxu0 %v5440_v7  ;;  %v5524_v7 = vld [vmem:[%s7006_s4 + $0x48] sm:$0xff]  }
 0x1cd   : > { %3794 = vmatpush1.bf16.msra.mxu1 %v5435_v8  ;;  %v3531_v8 = vrot.slane %v6295_v41, 2  ;;  %v5528_v41 = vld [vmem:[%s7006_s4 + $0x58] sm:$0xff]  }
 0x1ce   : > { %3795 = vmatprep.subr.bf16.mxu1 %v5443_v9  ;;  %v5525_v9 = vld [vmem:[%s7006_s4 + $0x8] sm:$0xff]  }
 0x1cf   : > { %3400 = vmatpush1.bf16.msra.mxu0 %v5438_v10  ;;  %v5527_v10 = vld [vmem:[%s7006_s4 + $0x10] sm:$0xff]  }
 0x1d0   : > { %3401 = vmatprep.subr.bf16.mxu0 %v5446_v11  ;;  %v5529_v11 = vld [vmem:[%s7006_s4 + $0x18] sm:$0xff]  }
 0x1d1   : > { %3796 = vmatpush1.bf16.msra.mxu1 %v5441_v12  ;;  %v5605_v12 = vmov 1966171168  }
 0x1d2   : > { %3797 = vmatprep.subr.bf16.mxu1 %v5449_v16  ;;  %v1872_v16 = vunpack.c.l.s4 %v5605_v12 }
 0x1d3   : > { %3402 = vmatpush1.bf16.msra.mxu0 %v5444_v17  ;;  %v1874_v17 = vlaneseq }
 0x1d4   : > { %3403 = vmatprep.subr.bf16.mxu0 %v5452_v18  ;;  %v1873_v18 = vunpack.c.0.s8 %v1872_v16 }
 0x1d5   : > { %3798 = vmatpush1.bf16.msra.mxu1 %v5447_v19  ;;  %v6906_v19 = vshrl.u32 %v1874_v17, 7 }
 0x1d6   : > { %3799 = vmatprep.subr.bf16.mxu1 %v5455_v20 }
 0x1d7   : > { %3404 = vmatpush1.bf16.msra.mxu0 %v5450_v14  ;;  %v6909_v14 = vsub.s32 %v1873_v18, %v6906_v19 }
 0x1d8   : > { %3405 = vmatprep.subr.bf16.mxu0 %v5458_v21 }
 0x1d9   : > { %3800 = vmatpush1.bf16.msra.mxu1 %v5453_v22 }
 0x1da   : > { %3801 = vmatprep.subr.bf16.mxu1 %v5461_v23 }
 0x1db   : > { %3406 = vmatpush1.bf16.msra.mxu0 %v5456_v24 }
 0x1dc   : > { %3407 = vmatprep.subr.bf16.mxu0 %v5464_v15 }
 0x1dd   : > { %3802 = vmatpush1.bf16.msra.mxu1 %v5459_v25 }
 0x1de   : > { %3803 = vmatprep.subr.bf16.mxu1 %v5467_v26 }
 0x1df   : > { %3408 = vmatpush1.bf16.msra.mxu0 %v5462_v13 }
 0x1e0   : > { %3409 = vmatprep.subr.bf16.mxu0 %v5470_v27 }
 0x1e1   : > { %3804 = vmatpush1.bf16.msra.mxu1 %v5465_v28  ;;  %v1497_v28 = vld [vmem:[%s7005_s3] sm:$0x3] }
 0x1e2   : > { %3805 = vmatprep.subr.bf16.mxu1 %v5473_v29 }
 0x1e3   : > { %3410 = vmatpush1.bf16.msra.mxu0 %v5468_v30 }
 0x1e4   : > { %3420 = vmatprep.subr.bf16.mxu0 %v5476_v31 }
 0x1e5   : > { %3806 = vmatpush1.bf16.msra.mxu1 %v5471_v32 }
 0x1e6   : > { %3412 = vmatmul.mubr.bf16.vlgmr.msra.gmra.mrb[36].mxu0 %v3133_v34  ;;  %3816 = vmatprep.subr.bf16.mxu1 %v5479_v43  ;;  %v5530_v34 = vld [vmem:[%s7006_s4 + $0x60] sm:$0xff]  }
 0x1e7   : > { %3421 = vmatpush1.bf16.msra.mxu0 %v5474_v33  ;;  %3452 = vmatprep.mubr.bf16.mxu0 %v5602_v2 }
 0x1e8   : > { %3808 = vmatmul.mubr.bf16.vlgmr.msra.gmra.mrb[52].mxu1 %v3529_v36  ;;  %3422 = vmatprep.subr.bf16.mxu0 %v5482_v47  ;;  %v5531_v47 = vld [vmem:[%s7006_s4 + $0x20] sm:$0xff]   ;;  %v5533_v36 = vld [vmem:[%s7006_s4 + $0x28] sm:$0xff]  }
 0x1e9   : > { %3817 = vmatpush1.bf16.msra.mxu1 %v5477_v35  ;;  %3848 = vmatprep.mubr.bf16.mxu1 %v5602_v2  ;;  %v5489_v2 = vld [vmem:[%s7004_s2 + $0x8a0] ss:$8 sps:$4 sm:$0xff]  }
 0x1ea   : > { %3818 = vmatprep.subr.bf16.mxu1 %v5485_v37  ;;  %v5532_v35 = vld [vmem:[%s7006_s4 + $0x68] sm:$0xff]   ;;  %v5534_v37 = vld [vmem:[%s7006_s4 + $0x70] sm:$0xff]  }
 0x1eb   : > { %3423 = vmatpush1.bf16.msra.mxu0 %v5480_v42  ;;  %v5535_v42 = vld [vmem:[%s7006_s4 + $0x30] sm:$0xff]  }
 0x1ec   : > { %3424 = vmatprep.subr.bf16.mxu0 %v5488_v39  ;;  %v5536_v39 = vld [vmem:[%s7006_s4 + $0x78] sm:$0xff]  }
 0x1ed   : > { %3819 = vmatpush1.bf16.msra.mxu1 %v5483_v51  ;;  %v5537_v51 = vld [vmem:[%s7006_s4 + $0x38] sm:$0xff]  }
 0x1ee   : > { %3820 = vmatprep.subr.bf16.mxu1 %v5491_v40 }
 0x1ef   : > { %3425 = vmatpush1.bf16.msra.mxu0 %v5486_v44 }
 0x1f0   : > { %3426 = vmatprep.subr.bf16.mxu0 %v5494_v45 }
 0x1f1   : > { %3821 = vmatpush1.bf16.msra.mxu1 %v5489_v2 }
 0x1f2   : > { %3822 = vmatprep.subr.bf16.mxu1 %v5497_v46 }
 0x1f3   : > { %3427 = vmatpush1.bf16.msra.mxu0 %v5492_v48 }
 0x1f4   : > { %3428 = vmatprep.subr.bf16.mxu0 %v5500_v49 }
 0x1f5   : > { %3823 = vmatpush1.bf16.msra.mxu1 %v5495_v50 }
 0x1f6   : > { %3824 = vmatprep.subr.bf16.mxu1 %v5503_v52 }
 0x1f7   : > { %3429 = vmatpush1.bf16.msra.mxu0 %v5498_v53 }
 0x1f8   : > { %3430 = vmatprep.subr.bf16.mxu0 %v5506_v54 }
 0x1f9   : > { %3825 = vmatpush1.bf16.msra.mxu1 %v5501_v55 }
 0x1fa   : > { %3826 = vmatprep.subr.bf16.mxu1 %v5509_v56 }
 0x1fb   : > { %3431 = vmatpush1.bf16.msra.mxu0 %v5504_v57 }
 0x1fc   : > { %3432 = vmatprep.subr.bf16.mxu0 %v5512_v58 }
 0x1fd   : > { %3827 = vmatpush1.bf16.msra.mxu1 %v5507_v59 }
 0x1fe   : > { %3828 = vmatprep.subr.bf16.mxu1 %v5515_v60 }
 0x1ff   : > { %3433 = vmatpush1.bf16.msra.mxu0 %v5510_v61 }
 0x200   : > { %3434 = vmatprep.subr.bf16.mxu0 %v5518_v62 }
 0x201   : > { %3829 = vmatpush1.bf16.msra.mxu1 %v5513_v63 }
 0x202   : > { %3830 = vmatprep.subr.bf16.mxu1 %v5521_v0 }
 0x203   : > { %3435 = vmatpush1.bf16.msra.mxu0 %v5516_v1 }
 0x204   : > { %4857 = vmatprep.subr.bf16.mxu0 %v5522_v4 }
 0x205   : > { %3831 = vmatpush1.bf16.msra.mxu1 %v5519_v3 }
 0x206   : > { %3453 = vmatmul.mubr.bf16.vlgmr.msra.gmra.mrb[36].mxu0 %v3135_v6 }
 0x207   : > { %4858 = vmatpush3.bf16.msra.mxu0 %v5523_v5 }
 0x208   : > { %3849 = vmatmul.mubr.bf16.vlgmr.msra.gmra.mrb[52].mxu1 %v3531_v8  ;;  %4859 = vmatprep.subr.bf16.mxu0 %v5524_v7 }
 0x20b   : > { %4860 = vmatpush3.bf16.msra.mxu0 %v5525_v9 }
 0x20c   : > { %4861 = vmatprep.subr.bf16.mxu0 %v5526_v38 }
 0x20f   : > { %4862 = vmatpush3.bf16.msra.mxu0 %v5527_v10 }
 0x210   : > { %4863 = vmatprep.subr.bf16.mxu0 %v5528_v41  ;;  %v3883_v41 = vsub.s32 1, %v6906_v19 }
 0x213   : > { %4864 = vmatpush3.bf16.msra.mxu0 %v5529_v11  ;;  %v3879_v11 = vsub.s32 0, %v6906_v19 }
 0x214   : > { %4865 = vmatprep.subr.bf16.mxu0 %v5530_v34 }
 0x217   : > { %4866 = vmatpush3.bf16.msra.mxu0 %v5531_v47 }
 0x218   : > { %4867 = vmatprep.subr.bf16.mxu0 %v5532_v35 }
 0x219   : > { %v1861_v20 = vpop.f32.mrb[28].mxu0 }
 0x21a   : > { %v1863_v21 = vpop.f32.mrb[29].mxu0 }
 0x21b   : > { %v1870_v22 = vcombine.low %v1861_v20, %v1863_v21  ;;  %v1865_v23 = vpop.f32.mrb[30].mxu0  ;;  %v2263_v24 = vpop.f32.mrb[44].mxu1  ;;  %4868 = vmatpush3.bf16.msra.mxu0 %v5533_v36 }
 0x21c   : > { %v1866_v15 = vpop.f32.mrb[31].mxu0  ;;  %v2265_v25 = vpop.f32.mrb[45].mxu1  ;;  %4869 = vmatprep.subr.bf16.mxu0 %v5534_v37 }
 0x21d   : > { %v1877_v26 = vrot.slane %v1870_v22, %v6909_v14  ;;  %v2272_v13 = vcombine.low %v2263_v24, %v2265_v25  ;;  %v2267_v27 = vpop.f32.mrb[46].mxu1  ;;  %v3921_v22 = vld [vmem:[%s7007_s5] sm:$0x1] }
 0x21e   : > { %v2268_v29 = vpop.f32.mrb[47].mxu1 }
 0x21f   : > { %v1884_v30 = vrot.slane %v1877_v26, %v6909_v14  ;;  %v2279_v31 = vrot.slane %v2272_v13, %v6909_v14  ;;  %4870 = vmatpush3.bf16.msra.mxu0 %v5535_v42 }
 0x220   : > { %4871 = vmatprep.subr.bf16.mxu0 %v5536_v39 }
 0x221   : > { %v1886_v32 = vadd.f32 %v1884_v30, %v1497_v28  ;;  %v2286_v43 = vrot.slane %v2279_v31, %v6909_v14 }
 0x223   : > { %v2288_v33 = vadd.f32 %v2286_v43, %v1886_v32  ;;  %4872 = vmatpush3.bf16.msra.mxu0 %v5537_v51 }
 0x279   : > { %v2662_v40 = vpop.f32.mrb[32].mxu0 }
 0x27a   : > { %v2664_v44 = vpop.f32.mrb[33].mxu0 }
 0x27b   : > { %v2671_v45 = vcombine.low %v2662_v40, %v2664_v44  ;;  %v2666_v2 = vpop.f32.mrb[34].mxu0  ;;  %v3058_v46 = vpop.f32.mrb[48].mxu1 }
 0x27c   : > { %v2667_v48 = vpop.f32.mrb[35].mxu0  ;;  %v3060_v49 = vpop.f32.mrb[49].mxu1 }
 0x27d   : > { %v2678_v50 = vrot.slane %v2671_v45, %v6909_v14  ;;  %v3067_v52 = vcombine.low %v3058_v46, %v3060_v49  ;;  %v3062_v53 = vpop.f32.mrb[50].mxu1 }
 0x27e   : > { %v3063_v54 = vpop.f32.mrb[51].mxu1 }
 0x27f   : > { %v2685_v55 = vrot.slane %v2678_v50, %v6909_v14  ;;  %v3074_v56 = vrot.slane %v3067_v52, %v6909_v14 }
 0x281   : > { %v2687_v57 = vadd.f32 %v2685_v55, %v2288_v33  ;;  %v3081_v58 = vrot.slane %v3074_v56, %v6909_v14 }
 0x283   : > { %v3083_v59 = vadd.f32 %v3081_v58, %v2687_v57 }
 0x2d9   : > { %v3454_v60 = vpop.f32.mrb[36].mxu0 }
 0x2da   : > { %v3456_v61 = vpop.f32.mrb[37].mxu0 }
 0x2db   : > { %v3463_v62 = vcombine.low %v3454_v60, %v3456_v61  ;;  %v3458_v63 = vpop.f32.mrb[38].mxu0  ;;  %v3850_v0 = vpop.f32.mrb[52].mxu1 }
 0x2dc   : > { %v3459_v1 = vpop.f32.mrb[39].mxu0  ;;  %v3852_v3 = vpop.f32.mrb[53].mxu1 }
 0x2dd   : > { %v3470_v4 = vrot.slane %v3463_v62, %v6909_v14  ;;  %v3859_v5 = vcombine.low %v3850_v0, %v3852_v3  ;;  %v3854_v6 = vpop.f32.mrb[54].mxu1 }
 0x2de   : > { %v3855_v7 = vpop.f32.mrb[55].mxu1 }
 0x2df   : > { %v3477_v8 = vrot.slane %v3470_v4, %v6909_v14  ;;  %v3866_v9 = vrot.slane %v3859_v5, %v6909_v14 }
 0x2e1   : > { %v3479_v38 = vadd.f32 %v3477_v8, %v3083_v59  ;;  %v3873_v10 = vrot.slane %v3866_v9, %v6909_v14 }
 0x2e3   : > { %v3875_v12 = vadd.f32 %v3873_v10, %v3479_v38 }
 0x2e5   : > { %v3884_v16 = vrot.slane %v3875_v12, %v3883_v41  ;;  %v3880_v17 = vrot.slane %v3875_v12, %v3879_v11 }
 0x2e7   : > { %v3888_v18 = vpack.c.bf16 %v3884_v16, %v3884_v16  ;;  %v3887_v20 = vpack.c.bf16 %v3880_v17, %v3880_v17 }
 0x2e9   : > { %4050 = vmatprep.mubr.bf16.mxu0 %v3888_v18 }
 0x2ea   : > { %4051 = vmatmul.mubr.bf16.vlgmr.msra.gmra.mrb[40].mxu0 %v3887_v20 }
 0x3bd   : > { %v4873_v21 = vpop.f32.mrb[40].mxu0 }
 0x3be   : > { %v4874_v23 = vpop.f32.mrb[41].mxu0 }
 0x3bf   : > { %v4875_v14 = vadd.f32 %v4874_v23, %v4873_v21  ;;  %v4876_v19 = vpop.f32.mrb[42].mxu0 }
 0x3c0   : > { %v4877_v24 = vpop.f32.mrb[43].mxu0 }
 0x3c1   : > { %v4053_v15 = vadd.f32 %v4875_v14, %v3921_v22 }
 0x3c3   : > { %4059 = vst.msk [vmem:[%s243_s18] sm:$0x1] %vm4058_vm3, %v4053_v15 }
 0x3c4   : > { %5551 = shalt.err (!%p5548_p3)
}
 0x3c5   : > { %s5552_s11 = scalar_lea.hbm %s6960_s28, 16  ;;  %s5556_s14 = scalar_lea.hbm %s7008_s6, 32 }
 0x3c6   : > { %p5553_p4 = scmp.ne.s32.totalorder %s6960_s28, %s5552_s11  ;;  %p5557_p9 = scmp.lt.u32.totalorder %s6960_s28, %s7008_s6 }
 0x3c7   : > { %p5558_p10 = scmp.lt.u32.totalorder %s5556_s14, %s5552_s11  ;;  %p5560_p12 = scmp.lt.u32.totalorder %s5552_s11, %s6960_s28 }
 0x3c8   : > { %p5554_p7 = pnand %p5553_p4, %p5680_p5 }
 0x3c9   : > { %p5559_p11 = por %p5558_p10, %p5557_p9 }
 0x3ca   : > { %p5555_p8 = pneg %p5554_p7 }
 0x3cb   : > { %p5561_p13 = por %p5560_p12, %p5559_p11 }
 0x3cd   : > { %p5562_p0 = pnand %p5561_p13, %p5555_p8 }
 0x3cf   : > { %5565 = shalt.err (!%p5562_p0)
}
 0x3d0   : > { %4975 = dma.vmem_to_hbm [thread:$0]  (%p5680_p5), %s6962_s19, 16, %s6960_s28, %s4061_s29  }
 0x3d1 PF: > { %p4981_p1 = scmp.ge.s32.totalorder %s5600_s24, 2  ;;  %s4085_s18 = sand.u32 1, %s5588_s21  }
 0x3d2   : > { %s4086_s20 = scalar_lea.sflag [#allocation3], %s4085_s18 }
 0x3d3   : > { %p4978_p2 = pnand %p4981_p1, %p5684_p6 }
 0x3d5   : > { %5583 = dma.done.wait (!%p4978_p2), %s4086_s20, 16  }
 0x3d6   : > { %5585 = vsyncadd (!%p4978_p2), %s4086_s20, 4294967280  ;;  %p16_p3 = scmp.ge.s32.totalorder %s5667_s27, 4   ;;  %s7011_s21 = smov %s5592_s22 }
 0x3d7   : > { %s7012_s22 = smov %s5596_s23  ;;  %s7013_s23 = smov %s5678_s30 }
 0x3d8   : > { %s7014_s24 = smov %s5667_s27  ;;  %18 = sbr.rel (!%p16_p3) target bundleno = 3 (0x3), region = 95 }
 0x3df   :  { %4090 = vsyncpa [#allocation3], 1 }
 0x3e0   :  { %4092 = vsyncpa [#allocation3 + $0x1], 1 }

</bundles_post_ra>
